<compile_context>
chip_gen: v6e
topology: v6e:2x2x1
jax: 0.10.0
libtpu: 0.0.40
codegen_flags: <defaults>
</compile_context>

<pallas_src>
import math
import functools

import jax
import jax.numpy as jnp
from jax import lax
from jax.experimental import pallas as pl
from jax.experimental.pallas import tpu as pltpu

_EPS = 1e-5          # nn.LayerNorm default eps
SEQ = 3
DIM = 32
FEAT = SEQ * DIM     # 96


def _round_up(n, m):
    return ((n + m - 1) // m) * m


# ----------------------------------------------------------------------------
# Kernel
# ----------------------------------------------------------------------------
def _transformer_kernel(x_ref, wqkv_ref, bqkv_ref, rsel_ref, bsel_ref,
                        wz_ref, wff_ref, vec_ref, out_ref, *, multi_head):
    """One batch tile: x_ref block is (TB, 96) = (batch, seq*feat)."""
    W = SEQ * multi_head                      # score columns per key position j

    x = x_ref[...]                            # (TB, 96) f32
    vec = vec_ref[...]                        # (6, 96)
    g1, b1 = vec[0:1, :], vec[1:2, :]
    g2, b2 = vec[2:3, :], vec[3:4, :]
    bz, bff = vec[4:5, :], vec[5:6, :]
    bqkv = bqkv_ref[...]                      # (3, 9*P)

    # ---- LN1: LayerNorm jointly over the (3, 32) = 96 features, per row ----
    mu = jnp.mean(x, axis=-1, keepdims=True)
    xc = x - mu
    var = jnp.mean(xc * xc, axis=-1, keepdims=True)
    z1 = xc * lax.rsqrt(var + _EPS) * g1 + b1

    # ---- fused Q/K/V projections, replicated per (query i, key j) block ----
    # qr[:, (i*3+j)*P + c] = q_i[c],  kr[:, (i*3+j)*P + c] = k_j[c],
    # vr[:, (j*3+i)*P + c] = v_j[c]   (all heads concatenated in c)
    qr = jnp.dot(z1, wqkv_ref[0], preferred_element_type=jnp.float32) + bqkv[0:1, :]
    kr = jnp.dot(z1, wqkv_ref[1], preferred_element_type=jnp.float32) + bqkv[1:2, :]
    vr = jnp.dot(z1, wqkv_ref[2], preferred_element_type=jnp.float32) + bqkv[2:3, :]

    # ---- attention scores: per-head dot product via a 0/1 reduction matmul ----
    # s[:, j*W + i*MH + h] = sum_d q_i[h*H+d] * k_j[h*H+d]
    s = jnp.dot(qr * kr, rsel_ref[...], preferred_element_type=jnp.float32)

    # ---- softmax over key position j (3 contiguous W-wide blocks), on VPU ----
    s0, s1, s2 = s[:, 0:W], s[:, W:2 * W], s[:, 2 * W:3 * W]
    m = jnp.maximum(jnp.maximum(s0, s1), s2)
    e0, e1, e2 = jnp.exp(s0 - m), jnp.exp(s1 - m), jnp.exp(s2 - m)
    r = pl.reciprocal(e0 + e1 + e2, approx=True)
    # NOTE: the reference's post-softmax 1/sqrt(hidden_dim) is folded into wz_ref.

    # ---- broadcast probs onto head dims; fuse P@V + makeZ into one matmul ----
    pb = (jnp.dot(e0 * r, bsel_ref[0], preferred_element_type=jnp.float32)
          + jnp.dot(e1 * r, bsel_ref[1], preferred_element_type=jnp.float32)
          + jnp.dot(e2 * r, bsel_ref[2], preferred_element_type=jnp.float32))
    mh = jnp.dot(pb * vr, wz_ref[...], preferred_element_type=jnp.float32) + bz

    z = mh + x                                # residual: z += x

    # ---- LN2 ----
    mu2 = jnp.mean(z, axis=-1, keepdims=True)
    zc = z - mu2
    var2 = jnp.mean(zc * zc, axis=-1, keepdims=True)
    zn = zc * lax.rsqrt(var2 + _EPS) * g2 + b2

    # ---- FF + residual ----
    out = jnp.dot(zn, wff_ref[...], preferred_element_type=jnp.float32) + bff + z
    out_ref[...] = out.astype(out_ref.dtype)


# ----------------------------------------------------------------------------
# Parameter preprocessing: build the block-structured fused weights
# ----------------------------------------------------------------------------
def build_kernel_params(p, *, hidden_dim, multi_head):
    H, MH = hidden_dim, multi_head
    P = MH * H                   # fused per-position QKV width
    S, D, F = SEQ, DIM, FEAT
    QW = S * S * P               # replicated q/k/v width
    W = S * MH                   # score columns per key position

    WqT, WkT, WvT = p['wq'], p['wk'], p['wv']              # (32, P) each
    bq, bk, bv = p['bq'].reshape(P), p['bk'].reshape(P), p['bv'].reshape(P)
    WzT = p['wz'].reshape(P, D)                            # rows ordered h*H + d
    WffT = p['wff']
    inv_sqrt_h = 1.0 / math.sqrt(H)

    wq_rep = jnp.zeros((F, QW), jnp.float32)
    wk_rep = jnp.zeros((F, QW), jnp.float32)
    wv_rep = jnp.zeros((F, QW), jnp.float32)
    rsel = jnp.zeros((QW, S * W), jnp.float32)
    bsel = jnp.zeros((S, W, QW), jnp.float32)
    wz_big = jnp.zeros((QW, F), jnp.float32)
    wff_big = jnp.zeros((F, F), jnp.float32)

    for i in range(S):
        wff_big = wff_big.at[i * D:(i + 1) * D, i * D:(i + 1) * D].set(WffT)
        for j in range(S):
            pq = (i * S + j) * P        # q/k replicated block offset
            pv = (j * S + i) * P        # v replicated / expanded-prob block offset
            wq_rep = wq_rep.at[i * D:(i + 1) * D, pq:pq + P].set(WqT)
            wk_rep = wk_rep.at[j * D:(j + 1) * D, pq:pq + P].set(WkT)
            wv_rep = wv_rep.at[j * D:(j + 1) * D, pv:pv + P].set(WvT)
            wz_big = wz_big.at[pv:pv + P, i * D:(i + 1) * D].set(WzT * inv_sqrt_h)
            for h in range(MH):
                scol = i * MH + h
                rsel = rsel.at[pq + h * H:pq + (h + 1) * H, j * W + scol].set(1.0)
                bsel = bsel.at[j, scol, pv + h * H:pv + (h + 1) * H].set(1.0)

    return {
        'wqkv': jnp.stack([wq_rep, wk_rep, wv_rep]),                 # (3, 96, QW)
        'bqkv': jnp.stack([jnp.tile(bq, S * S), jnp.tile(bk, S * S),
                           jnp.tile(bv, S * S)]),                    # (3, QW)
        'rsel': rsel,                                                # (QW, 3*W)
        'bsel': bsel,                                                # (3, W, QW)
        'wz': wz_big,                                                # (QW, 96)
        'wff': wff_big,                                              # (96, 96)
        'vec': jnp.stack([p['ln1_w'].reshape(F), p['ln1_b'].reshape(F),
                          p['ln2_w'].reshape(F), p['ln2_b'].reshape(F),
                          jnp.tile(p['bz'].reshape(D), S),
                          jnp.tile(p['bff'].reshape(D), S)]),        # (6, 96)
    }


# ----------------------------------------------------------------------------
# Wrapper
# ----------------------------------------------------------------------------
def transformer_forward(x, params, *, hidden_dim, multi_head, block_b=1024):
    B, S, D = x.shape
    assert S == SEQ and D == DIM

    kp = build_kernel_params(params, hidden_dim=hidden_dim, multi_head=multi_head)

    # Batch tile: big enough to amortize per-grid-step overhead, multiple of 8
    # (sublane), small enough to stay far under the scoped-VMEM limit on every
    # TPU generation (incl. v7x's 64 MiB).
    TB = min(_round_up(block_b, 8), _round_up(B, 8))
    Bp = _round_up(B, TB)

    xf = x.reshape(B, FEAT)
    if Bp != B:
        xf = jnp.pad(xf, ((0, Bp - B), (0, 0)))

    kernel = functools.partial(_transformer_kernel, multi_head=multi_head)

    def full(a):
        nd = a.ndim
        return pl.BlockSpec(a.shape, lambda b, _nd=nd: (0,) * _nd)

    weights = (kp['wqkv'], kp['bqkv'], kp['rsel'], kp['bsel'],
               kp['wz'], kp['wff'], kp['vec'])

    out = pl.pallas_call(
        kernel,
        out_shape=jax.ShapeDtypeStruct((Bp, FEAT), x.dtype),
        grid=(Bp // TB,),
        in_specs=[pl.BlockSpec((TB, FEAT), lambda b: (b, 0))] +
                 [full(w) for w in weights],
        out_specs=pl.BlockSpec((TB, FEAT), lambda b: (b, 0)),
        compiler_params=pltpu.CompilerParams(
            dimension_semantics=("parallel",)),
    )(xf, *weights)

    return out[:B].reshape(B, SEQ, DIM)


# ----------------------------------------------------------------------------
# Deterministic synthetic parameters (PyTorch-equivalent shapes, pre-transposed)
# ----------------------------------------------------------------------------
def init_params(key, hidden_dim, multi_head):
    ks = jax.random.split(key, 10)
    H, MH = hidden_dim, multi_head

    def u(k, shape, fan_in):
        bound = 1.0 / math.sqrt(fan_in)
        return jax.random.uniform(k, shape, jnp.float32, -bound, bound)

    return {
        'ln1_w': jnp.ones((SEQ, DIM), jnp.float32),
        'ln1_b': jnp.zeros((SEQ, DIM), jnp.float32),
        'ln2_w': jnp.ones((SEQ, DIM), jnp.float32),
        'ln2_b': jnp.zeros((SEQ, DIM), jnp.float32),
        # makeQ/K/V: torch weight (H, 32) per head; stored as W^T concatenated
        # over heads -> (32, MH*H)
        'wq': u(ks[0], (DIM, MH * H), DIM),
        'bq': u(ks[1], (1, MH * H), DIM),
        'wk': u(ks[2], (DIM, MH * H), DIM),
        'bk': u(ks[3], (1, MH * H), DIM),
        'wv': u(ks[4], (DIM, MH * H), DIM),
        'bv': u(ks[5], (1, MH * H), DIM),
        # makeZ: torch weight (32, MH*H); stored as W^T reshaped (MH, H, 32)
        'wz': u(ks[6], (MH, H, DIM), MH * H),
        'bz': u(ks[7], (1, DIM), MH * H),
        # FF: torch weight (32, 32); stored as W^T
        'wff': u(ks[8], (DIM, DIM), DIM),
        'bff': u(ks[9], (1, DIM), DIM),
    }


def reference_forward(x, p, *, hidden_dim, multi_head):
    """Pure-JAX reference mirroring the PyTorch forward exactly."""
    def ln(v, w, b):
        mu = jnp.mean(v, axis=(1, 2), keepdims=True)
        var = jnp.mean((v - mu) ** 2, axis=(1, 2), keepdims=True)
        return (v - mu) / jnp.sqrt(var + _EPS) * w + b

    z1 = ln(x, p['ln1_w'], p['ln1_b'])
    q_all = z1 @ p['wq'] + p['bq'][0]
    k_all = z1 @ p['wk'] + p['bk'][0]
    v_all = z1 @ p['wv'] + p['bv'][0]
    mh = jnp.zeros_like(x)
    for h in range(multi_head):
        sl = slice(h * hidden_dim, (h + 1) * hidden_dim)
        q, k, v = q_all[:, :, sl], k_all[:, :, sl], v_all[:, :, sl]
        s = jnp.einsum('bqd,bkd->bqk', q, k)
        pm = jax.nn.softmax(s, axis=2) / math.sqrt(hidden_dim)
        zh = jnp.einsum('bqk,bkd->bqd', pm, v)
        mh = mh + zh @ p['wz'][h]
    z = mh + p['bz'][0] + x
    zn = ln(z, p['ln2_w'], p['ln2_b'])
    return zn @ p['wff'] + p['bff'][0] + z


if __name__ == "__main__":
    hidden_dim, multi_head = 8, 4

    key = jax.random.PRNGKey(0)
    k_x, k_p = jax.random.split(key)
    params = init_params(k_p, hidden_dim, multi_head)

    # Small demo shape matching the module's (batch, 3, 32) input.
    B = 2
    x = jax.random.normal(k_x, (B, SEQ, DIM), jnp.float32)
    out = jax.block_until_ready(
        transformer_forward(x, params, hidden_dim=hidden_dim, multi_head=multi_head))
    ref = reference_forward(x, params, hidden_dim=hidden_dim, multi_head=multi_head)
    assert out.shape == (B, SEQ, DIM)
    assert jnp.allclose(out, ref, rtol=1e-3, atol=1e-3), \
        "mismatch vs pure-JAX reference (small batch)"

    # Larger batch exercising the batch-tiled grid (multiple tiles + padding).
    B2 = 600
    x2 = jax.random.normal(jax.random.PRNGKey(1), (B2, SEQ, DIM), jnp.float32)
    out2 = jax.block_until_ready(
        transformer_forward(x2, params, hidden_dim=hidden_dim,
                            multi_head=multi_head, block_b=256))
    ref2 = reference_forward(x2, params, hidden_dim=hidden_dim, multi_head=multi_head)
    assert jnp.allclose(out2, ref2, rtol=1e-3, atol=1e-3), \
        "mismatch vs pure-JAX reference (tiled batch)"

    print("KERNEL_OK")
</pallas_src>

<mosaic_0001>
module attributes {stable_mosaic.version = 11 : i64} {
  func.func @_transformer_kernel(%arg0: i32, %arg1: memref<8x96xf32, #tpu.memory_space<vmem>>, %arg2: memref<3x96x288xf32, #tpu.memory_space<vmem>>, %arg3: memref<3x288xf32, #tpu.memory_space<vmem>>, %arg4: memref<288x36xf32, #tpu.memory_space<vmem>>, %arg5: memref<3x12x288xf32, #tpu.memory_space<vmem>>, %arg6: memref<288x96xf32, #tpu.memory_space<vmem>>, %arg7: memref<96x96xf32, #tpu.memory_space<vmem>>, %arg8: memref<6x96xf32, #tpu.memory_space<vmem>>, %arg9: memref<8x96xf32, #tpu.memory_space<vmem>>) attributes {dimension_semantics = [#tpu.dimension_semantics<parallel>], iteration_bounds = array<i64: 1>, scalar_prefetch = 0 : i64, scratch_operands = 0 : i64, tpu.core_type = #tpu.core_type<tc>, window_params = [{transform_indices = @transform_0, window_bounds = array<i64: 8, 96>}, {pipeline_mode = #tpu.pipeline_mode<synchronous>, transform_indices = @transform_1, window_bounds = array<i64: 3, 96, 288>}, {pipeline_mode = #tpu.pipeline_mode<synchronous>, transform_indices = @transform_2, window_bounds = array<i64: 3, 288>}, {pipeline_mode = #tpu.pipeline_mode<synchronous>, transform_indices = @transform_3, window_bounds = array<i64: 288, 36>}, {pipeline_mode = #tpu.pipeline_mode<synchronous>, transform_indices = @transform_4, window_bounds = array<i64: 3, 12, 288>}, {pipeline_mode = #tpu.pipeline_mode<synchronous>, transform_indices = @transform_5, window_bounds = array<i64: 288, 96>}, {pipeline_mode = #tpu.pipeline_mode<synchronous>, transform_indices = @transform_6, window_bounds = array<i64: 96, 96>}, {pipeline_mode = #tpu.pipeline_mode<synchronous>, transform_indices = @transform_7, window_bounds = array<i64: 6, 96>}, {transform_indices = @transform_8, window_bounds = array<i64: 8, 96>}]} {
    %c0 = arith.constant 0 : index
    %c0_0 = arith.constant 0 : index
    %0 = vector.load %arg1[%c0, %c0_0] : memref<8x96xf32, #tpu.memory_space<vmem>>, vector<8x96xf32>
    %c0_1 = arith.constant 0 : index
    %c0_2 = arith.constant 0 : index
    %1 = vector.load %arg8[%c0_1, %c0_2] : memref<6x96xf32, #tpu.memory_space<vmem>>, vector<6x96xf32>
    %2 = vector.extract_strided_slice %1 {offsets = [0, 0], sizes = [1, 96], strides = [1, 1]} : vector<6x96xf32> to vector<1x96xf32>
    %3 = vector.extract_strided_slice %1 {offsets = [1, 0], sizes = [1, 96], strides = [1, 1]} : vector<6x96xf32> to vector<1x96xf32>
    %4 = vector.extract_strided_slice %1 {offsets = [2, 0], sizes = [1, 96], strides = [1, 1]} : vector<6x96xf32> to vector<1x96xf32>
    %5 = vector.extract_strided_slice %1 {offsets = [3, 0], sizes = [1, 96], strides = [1, 1]} : vector<6x96xf32> to vector<1x96xf32>
    %6 = vector.extract_strided_slice %1 {offsets = [4, 0], sizes = [1, 96], strides = [1, 1]} : vector<6x96xf32> to vector<1x96xf32>
    %7 = vector.extract_strided_slice %1 {offsets = [5, 0], sizes = [1, 96], strides = [1, 1]} : vector<6x96xf32> to vector<1x96xf32>
    %c0_3 = arith.constant 0 : index
    %c0_4 = arith.constant 0 : index
    %8 = vector.load %arg3[%c0_3, %c0_4] : memref<3x288xf32, #tpu.memory_space<vmem>>, vector<3x288xf32>
    %cst = arith.constant dense<0.000000e+00> : vector<8xf32>
    %9 = vector.multi_reduction <add>, %0, %cst [1] : vector<8x96xf32> to vector<8xf32>
    %10 = vector.shape_cast %9 : vector<8xf32> to vector<8x1xf32>
    %cst_5 = arith.constant 9.600000e+01 : f32
    %11 = vector.broadcast %cst_5 : f32 to vector<8x1xf32>
    %12 = arith.divf %10, %11 : vector<8x1xf32>
    %13 = vector.broadcast %12 : vector<8x1xf32> to vector<8x96xf32>
    %14 = arith.subf %0, %13 : vector<8x96xf32>
    %15 = arith.mulf %14, %14 : vector<8x96xf32>
    %cst_6 = arith.constant dense<0.000000e+00> : vector<8xf32>
    %16 = vector.multi_reduction <add>, %15, %cst_6 [1] : vector<8x96xf32> to vector<8xf32>
    %17 = vector.shape_cast %16 : vector<8xf32> to vector<8x1xf32>
    %cst_7 = arith.constant 9.600000e+01 : f32
    %18 = vector.broadcast %cst_7 : f32 to vector<8x1xf32>
    %19 = arith.divf %17, %18 : vector<8x1xf32>
    %cst_8 = arith.constant 9.99999974E-6 : f32
    %20 = vector.broadcast %cst_8 : f32 to vector<8x1xf32>
    %21 = arith.addf %19, %20 : vector<8x1xf32>
    %22 = math.rsqrt %21 : vector<8x1xf32>
    %23 = vector.broadcast %22 : vector<8x1xf32> to vector<8x96xf32>
    %24 = arith.mulf %14, %23 : vector<8x96xf32>
    %25 = vector.broadcast %2 : vector<1x96xf32> to vector<8x96xf32>
    %26 = arith.mulf %24, %25 : vector<8x96xf32>
    %27 = vector.broadcast %3 : vector<1x96xf32> to vector<8x96xf32>
    %28 = arith.addf %26, %27 : vector<8x96xf32>
    %c0_9 = arith.constant 0 : index
    %c0_10 = arith.constant 0 : index
    %c0_11 = arith.constant 0 : index
    %29 = vector.load %arg2[%c0_9, %c0_10, %c0_11] : memref<3x96x288xf32, #tpu.memory_space<vmem>>, vector<1x96x288xf32>
    %30 = vector.shape_cast %29 : vector<1x96x288xf32> to vector<96x288xf32>
    %cst_12 = arith.constant dense<0.000000e+00> : vector<8x288xf32>
    %31 = tpu.matmul %28, %30, %cst_12 {dimension_numbers = #tpu.dot_dimension_numbers<[1], [0], [0], [1], [0, 0, 1, 1], [], []>} : vector<8x96xf32>, vector<96x288xf32>, vector<8x288xf32> -> vector<8x288xf32>
    %32 = vector.extract_strided_slice %8 {offsets = [0, 0], sizes = [1, 288], strides = [1, 1]} : vector<3x288xf32> to vector<1x288xf32>
    %33 = vector.broadcast %32 : vector<1x288xf32> to vector<8x288xf32>
    %34 = arith.addf %31, %33 : vector<8x288xf32>
    %c1 = arith.constant 1 : index
    %c0_13 = arith.constant 0 : index
    %c0_14 = arith.constant 0 : index
    %35 = vector.load %arg2[%c1, %c0_13, %c0_14] : memref<3x96x288xf32, #tpu.memory_space<vmem>>, vector<1x96x288xf32>
    %36 = vector.shape_cast %35 : vector<1x96x288xf32> to vector<96x288xf32>
    %cst_15 = arith.constant dense<0.000000e+00> : vector<8x288xf32>
    %37 = tpu.matmul %28, %36, %cst_15 {dimension_numbers = #tpu.dot_dimension_numbers<[1], [0], [0], [1], [0, 0, 1, 1], [], []>} : vector<8x96xf32>, vector<96x288xf32>, vector<8x288xf32> -> vector<8x288xf32>
    %38 = vector.extract_strided_slice %8 {offsets = [1, 0], sizes = [1, 288], strides = [1, 1]} : vector<3x288xf32> to vector<1x288xf32>
    %39 = vector.broadcast %38 : vector<1x288xf32> to vector<8x288xf32>
    %40 = arith.addf %37, %39 : vector<8x288xf32>
    %c2 = arith.constant 2 : index
    %c0_16 = arith.constant 0 : index
    %c0_17 = arith.constant 0 : index
    %41 = vector.load %arg2[%c2, %c0_16, %c0_17] : memref<3x96x288xf32, #tpu.memory_space<vmem>>, vector<1x96x288xf32>
    %42 = vector.shape_cast %41 : vector<1x96x288xf32> to vector<96x288xf32>
    %cst_18 = arith.constant dense<0.000000e+00> : vector<8x288xf32>
    %43 = tpu.matmul %28, %42, %cst_18 {dimension_numbers = #tpu.dot_dimension_numbers<[1], [0], [0], [1], [0, 0, 1, 1], [], []>} : vector<8x96xf32>, vector<96x288xf32>, vector<8x288xf32> -> vector<8x288xf32>
    %44 = vector.extract_strided_slice %8 {offsets = [2, 0], sizes = [1, 288], strides = [1, 1]} : vector<3x288xf32> to vector<1x288xf32>
    %45 = vector.broadcast %44 : vector<1x288xf32> to vector<8x288xf32>
    %46 = arith.addf %43, %45 : vector<8x288xf32>
    %47 = arith.mulf %34, %40 : vector<8x288xf32>
    %c0_19 = arith.constant 0 : index
    %c0_20 = arith.constant 0 : index
    %48 = vector.load %arg4[%c0_19, %c0_20] : memref<288x36xf32, #tpu.memory_space<vmem>>, vector<288x36xf32>
    %cst_21 = arith.constant dense<0.000000e+00> : vector<8x36xf32>
    %49 = tpu.matmul %47, %48, %cst_21 {dimension_numbers = #tpu.dot_dimension_numbers<[1], [0], [0], [1], [0, 0, 1, 1], [], []>} : vector<8x288xf32>, vector<288x36xf32>, vector<8x36xf32> -> vector<8x36xf32>
    %50 = vector.extract_strided_slice %49 {offsets = [0, 0], sizes = [8, 12], strides = [1, 1]} : vector<8x36xf32> to vector<8x12xf32>
    %51 = vector.extract_strided_slice %49 {offsets = [0, 12], sizes = [8, 12], strides = [1, 1]} : vector<8x36xf32> to vector<8x12xf32>
    %52 = vector.extract_strided_slice %49 {offsets = [0, 24], sizes = [8, 12], strides = [1, 1]} : vector<8x36xf32> to vector<8x12xf32>
    %53 = arith.maximumf %50, %51 : vector<8x12xf32>
    %54 = arith.maximumf %53, %52 : vector<8x12xf32>
    %55 = arith.subf %50, %54 : vector<8x12xf32>
    %56 = math.exp %55 : vector<8x12xf32>
    %57 = arith.subf %51, %54 : vector<8x12xf32>
    %58 = math.exp %57 : vector<8x12xf32>
    %59 = arith.subf %52, %54 : vector<8x12xf32>
    %60 = math.exp %59 : vector<8x12xf32>
    %61 = arith.addf %56, %58 : vector<8x12xf32>
    %62 = arith.addf %61, %60 : vector<8x12xf32>
    %63 = tpu.reciprocal %62 {approx = true} : vector<8x12xf32> -> vector<8x12xf32>
    %64 = arith.mulf %56, %63 : vector<8x12xf32>
    %c0_22 = arith.constant 0 : index
    %c0_23 = arith.constant 0 : index
    %c0_24 = arith.constant 0 : index
    %65 = vector.load %arg5[%c0_22, %c0_23, %c0_24] : memref<3x12x288xf32, #tpu.memory_space<vmem>>, vector<1x12x288xf32>
    %66 = vector.shape_cast %65 : vector<1x12x288xf32> to vector<12x288xf32>
    %cst_25 = arith.constant dense<0.000000e+00> : vector<8x288xf32>
    %67 = tpu.matmul %64, %66, %cst_25 {dimension_numbers = #tpu.dot_dimension_numbers<[1], [0], [0], [1], [0, 0, 1, 1], [], []>} : vector<8x12xf32>, vector<12x288xf32>, vector<8x288xf32> -> vector<8x288xf32>
    %68 = arith.mulf %58, %63 : vector<8x12xf32>
    %c1_26 = arith.constant 1 : index
    %c0_27 = arith.constant 0 : index
    %c0_28 = arith.constant 0 : index
    %69 = vector.load %arg5[%c1_26, %c0_27, %c0_28] : memref<3x12x288xf32, #tpu.memory_space<vmem>>, vector<1x12x288xf32>
    %70 = vector.shape_cast %69 : vector<1x12x288xf32> to vector<12x288xf32>
    %cst_29 = arith.constant dense<0.000000e+00> : vector<8x288xf32>
    %71 = tpu.matmul %68, %70, %cst_29 {dimension_numbers = #tpu.dot_dimension_numbers<[1], [0], [0], [1], [0, 0, 1, 1], [], []>} : vector<8x12xf32>, vector<12x288xf32>, vector<8x288xf32> -> vector<8x288xf32>
    %72 = arith.addf %67, %71 : vector<8x288xf32>
    %73 = arith.mulf %60, %63 : vector<8x12xf32>
    %c2_30 = arith.constant 2 : index
    %c0_31 = arith.constant 0 : index
    %c0_32 = arith.constant 0 : index
    %74 = vector.load %arg5[%c2_30, %c0_31, %c0_32] : memref<3x12x288xf32, #tpu.memory_space<vmem>>, vector<1x12x288xf32>
    %75 = vector.shape_cast %74 : vector<1x12x288xf32> to vector<12x288xf32>
    %cst_33 = arith.constant dense<0.000000e+00> : vector<8x288xf32>
    %76 = tpu.matmul %73, %75, %cst_33 {dimension_numbers = #tpu.dot_dimension_numbers<[1], [0], [0], [1], [0, 0, 1, 1], [], []>} : vector<8x12xf32>, vector<12x288xf32>, vector<8x288xf32> -> vector<8x288xf32>
    %77 = arith.addf %72, %76 : vector<8x288xf32>
    %78 = arith.mulf %77, %46 : vector<8x288xf32>
    %c0_34 = arith.constant 0 : index
    %c0_35 = arith.constant 0 : index
    %79 = vector.load %arg6[%c0_34, %c0_35] : memref<288x96xf32, #tpu.memory_space<vmem>>, vector<288x96xf32>
    %cst_36 = arith.constant dense<0.000000e+00> : vector<8x96xf32>
    %80 = tpu.matmul %78, %79, %cst_36 {dimension_numbers = #tpu.dot_dimension_numbers<[1], [0], [0], [1], [0, 0, 1, 1], [], []>} : vector<8x288xf32>, vector<288x96xf32>, vector<8x96xf32> -> vector<8x96xf32>
    %81 = vector.broadcast %6 : vector<1x96xf32> to vector<8x96xf32>
    %82 = arith.addf %80, %81 : vector<8x96xf32>
    %83 = arith.addf %82, %0 : vector<8x96xf32>
    %cst_37 = arith.constant dense<0.000000e+00> : vector<8xf32>
    %84 = vector.multi_reduction <add>, %83, %cst_37 [1] : vector<8x96xf32> to vector<8xf32>
    %85 = vector.shape_cast %84 : vector<8xf32> to vector<8x1xf32>
    %cst_38 = arith.constant 9.600000e+01 : f32
    %86 = vector.broadcast %cst_38 : f32 to vector<8x1xf32>
    %87 = arith.divf %85, %86 : vector<8x1xf32>
    %88 = vector.broadcast %87 : vector<8x1xf32> to vector<8x96xf32>
    %89 = arith.subf %83, %88 : vector<8x96xf32>
    %90 = arith.mulf %89, %89 : vector<8x96xf32>
    %cst_39 = arith.constant dense<0.000000e+00> : vector<8xf32>
    %91 = vector.multi_reduction <add>, %90, %cst_39 [1] : vector<8x96xf32> to vector<8xf32>
    %92 = vector.shape_cast %91 : vector<8xf32> to vector<8x1xf32>
    %cst_40 = arith.constant 9.600000e+01 : f32
    %93 = vector.broadcast %cst_40 : f32 to vector<8x1xf32>
    %94 = arith.divf %92, %93 : vector<8x1xf32>
    %cst_41 = arith.constant 9.99999974E-6 : f32
    %95 = vector.broadcast %cst_41 : f32 to vector<8x1xf32>
    %96 = arith.addf %94, %95 : vector<8x1xf32>
    %97 = math.rsqrt %96 : vector<8x1xf32>
    %98 = vector.broadcast %97 : vector<8x1xf32> to vector<8x96xf32>
    %99 = arith.mulf %89, %98 : vector<8x96xf32>
    %100 = vector.broadcast %4 : vector<1x96xf32> to vector<8x96xf32>
    %101 = arith.mulf %99, %100 : vector<8x96xf32>
    %102 = vector.broadcast %5 : vector<1x96xf32> to vector<8x96xf32>
    %103 = arith.addf %101, %102 : vector<8x96xf32>
    %c0_42 = arith.constant 0 : index
    %c0_43 = arith.constant 0 : index
    %104 = vector.load %arg7[%c0_42, %c0_43] : memref<96x96xf32, #tpu.memory_space<vmem>>, vector<96x96xf32>
    %cst_44 = arith.constant dense<0.000000e+00> : vector<8x96xf32>
    %105 = tpu.matmul %103, %104, %cst_44 {dimension_numbers = #tpu.dot_dimension_numbers<[1], [0], [0], [1], [0, 0, 1, 1], [], []>} : vector<8x96xf32>, vector<96x96xf32>, vector<8x96xf32> -> vector<8x96xf32>
    %106 = vector.broadcast %7 : vector<1x96xf32> to vector<8x96xf32>
    %107 = arith.addf %105, %106 : vector<8x96xf32>
    %108 = arith.addf %107, %83 : vector<8x96xf32>
    %c0_45 = arith.constant 0 : index
    %c0_46 = arith.constant 0 : index
    %109 = vector.load %arg9[%c0_45, %c0_46] : memref<8x96xf32, #tpu.memory_space<vmem>>, vector<8x96xf32>
    tpu.vector_store %arg9[%c0_45, %c0_46], %108 {strides = array<i32>} : memref<8x96xf32, #tpu.memory_space<vmem>>, vector<8x96xf32>,
    return
  }
  func.func @transform_0(%arg0: i32) -> (i32, i32) {
    %c0_i32 = arith.constant 0 : i32
    %c0_i32_0 = arith.constant 0 : i32
    return %arg0, %c0_i32 : i32, i32
  }
  func.func @transform_1(%arg0: i32) -> (i32, i32, i32) {
    %c0_i32 = arith.constant 0 : i32
    %c0_i32_0 = arith.constant 0 : i32
    %c0_i32_1 = arith.constant 0 : i32
    %c0_i32_2 = arith.constant 0 : i32
    return %c0_i32, %c0_i32_0, %c0_i32_1 : i32, i32, i32
  }
  func.func @transform_2(%arg0: i32) -> (i32, i32) {
    %c0_i32 = arith.constant 0 : i32
    %c0_i32_0 = arith.constant 0 : i32
    %c0_i32_1 = arith.constant 0 : i32
    return %c0_i32, %c0_i32_0 : i32, i32
  }
  func.func @transform_3(%arg0: i32) -> (i32, i32) {
    %c0_i32 = arith.constant 0 : i32
    %c0_i32_0 = arith.constant 0 : i32
    %c0_i32_1 = arith.constant 0 : i32
    return %c0_i32, %c0_i32_0 : i32, i32
  }
  func.func @transform_4(%arg0: i32) -> (i32, i32, i32) {
    %c0_i32 = arith.constant 0 : i32
    %c0_i32_0 = arith.constant 0 : i32
    %c0_i32_1 = arith.constant 0 : i32
    %c0_i32_2 = arith.constant 0 : i32
    return %c0_i32, %c0_i32_0, %c0_i32_1 : i32, i32, i32
  }
  func.func @transform_5(%arg0: i32) -> (i32, i32) {
    %c0_i32 = arith.constant 0 : i32
    %c0_i32_0 = arith.constant 0 : i32
    %c0_i32_1 = arith.constant 0 : i32
    return %c0_i32, %c0_i32_0 : i32, i32
  }
  func.func @transform_6(%arg0: i32) -> (i32, i32) {
    %c0_i32 = arith.constant 0 : i32
    %c0_i32_0 = arith.constant 0 : i32
    %c0_i32_1 = arith.constant 0 : i32
    return %c0_i32, %c0_i32_0 : i32, i32
  }
  func.func @transform_7(%arg0: i32) -> (i32, i32) {
    %c0_i32 = arith.constant 0 : i32
    %c0_i32_0 = arith.constant 0 : i32
    %c0_i32_1 = arith.constant 0 : i32
    return %c0_i32, %c0_i32_0 : i32, i32
  }
  func.func @transform_8(%arg0: i32) -> (i32, i32) {
    %c0_i32 = arith.constant 0 : i32
    %c0_i32_0 = arith.constant 0 : i32
    return %arg0, %c0_i32 : i32, i32
  }
}

</mosaic_0001>

<bundles_post_ra>
// kernel: tpu_custom_call.1
= control target key start
LH: loop header
LB: loop body
LE: loop exit
PB: predicated region body
PF: predicated region fallthrough
CT: control target
= control target key end

     0   :  { %13 = vsyncpa [#allocation3], 0  ;;  %s2684_s0 = inlined_call_operand.vmem [shape: f32[8,96], index: 0, kind: input, shape index: {}]   ;;  %s2685_s1 = inlined_call_operand.hbm [shape: f32[3,96,288], index: 1, kind: input, shape index: {}]   ;;  %s2686_s2 = inlined_call_operand.vmem [shape: f32[3,288], index: 2, kind: input, shape index: {}]   ;;  %s2687_s3 = inlined_call_operand.vmem [shape: f32[288,36], index: 3, kind: input, shape index: {}]   ;;  %s2688_s4 = inlined_call_operand.hbm [shape: f32[3,12,288], index: 4, kind: input, shape index: {}]   ;;  %s2689_s5 = inlined_call_operand.vmem [shape: f32[288,96], index: 5, kind: input, shape index: {}]   ;;  %s2690_s6 = inlined_call_operand.vmem [shape: f32[96,96], index: 6, kind: input, shape index: {}]   ;;  %s2691_s7 = inlined_call_operand.vmem [shape: f32[6,96], index: 7, kind: input, shape index: {}]   ;;  %s2692_s8 = inlined_call_operand.hbm [shape: f32[8,96], index: 8, kind: output, shape index: {}]  }
   0x1   :  { %14 = vsyncpa [#allocation6], 0 }
   0x2   :  { %15 = vsyncpa [#allocation4], 0  ;;  %s2146_s27 = smov [#allocation2]  }
   0x3   :  { %s23_s28 = sshll.u32 %s2146_s27, 4  ;;  %s24_s28 = int_to_ptr.vmem [resolvable:$true] %s23_s28 }
   0x4   :  { %s2088_s29 = scalar_lea.vmem %s24_s28, 13824  ;;  %p2093_p1 = scmp.lt.s32.totalorder %s24_s28, %s24_s28 }
   0x5   :  { %p2089_p0 = scmp.ne.s32.totalorder %s24_s28, %s2088_s29  ;;  %p2094_p2 = scmp.lt.s32.totalorder %s2088_s29, %s2088_s29 }
   0x7   :  { %p2095_p3 = por %p2094_p2, %p2093_p1 }
   0x9   :  { %p2096_p4 = pnand %p2095_p3, %p2089_p0 }
   0xb   :  { %2099 = shalt.err (!%p2096_p4)
}
   0xc   :  { %s2147_s30 = smov 384   ;;  %s2148_s9 = smov 24  }
   0xd   :  { %29 = dma.hbm_to_vmem [thread:$0]  %s2685_s1, 13824, %s24_s28, [#allocation3], %s2147_s30, %s2147_s30, %s2148_s9  }
   0xe   :  { %s2149_s12 = smov [#allocation5]  }
   0xf   :  { %s39_s13 = sshll.u32 %s2149_s12, 4  ;;  %s40_s13 = int_to_ptr.vmem [resolvable:$true] %s39_s13 }
  0x10   :  { %s2108_s14 = scalar_lea.vmem %s40_s13, 2304  ;;  %p2113_p6 = scmp.lt.s32.totalorder %s40_s13, %s40_s13 }
  0x11   :  { %p2109_p5 = scmp.ne.s32.totalorder %s40_s13, %s2108_s14  ;;  %p2114_p7 = scmp.lt.s32.totalorder %s2108_s14, %s2108_s14 }
  0x13   :  { %p2115_p8 = por %p2114_p7, %p2113_p6 }
  0x15   :  { %p2116_p9 = pnand %p2115_p8, %p2109_p5 }
  0x17   :  { %2119 = shalt.err (!%p2116_p9)
}
  0x18   :  { %45 = dma.hbm_to_vmem [thread:$0]  %s2688_s4, 2304, %s40_s13, [#allocation6], %s2147_s30, %s2147_s30, %s2148_s9  }
  0x19   :  { %2140 = dma.done.wait [#allocation3], 13824  }
  0x1a   :  { %2141 = vsyncadd [#allocation3], 4294953472 }
  0x1b   :  { %2142 = dma.done.wait [#allocation6], 2304  }
  0x1c   :  { %2143 = vsyncadd [#allocation6], 4294964992  ;;  %vm62_vm0 = vcmask 785408   ;;  %v58_v0 = vld [vmem:[%s2684_s0] sm:$0xff]  ;;  %v121_v2 = vld [vmem:[#allocation2 + $0x110] sm:$0xff]  ;;  %v2150_v3 = vmov 0.0   ;;  %v77_v48 = vlaneseq }
  0x1d   :  { %v63_v1 = vsel %vm62_vm0, %v58_v0, 0.0  ;;  %163 = vmatprep.subr.mxu0 %v121_v2  ;;  %1905 = vmatprep.subr.mxu1 %v2150_v3  ;;  %v120_v9 = vld [vmem:[#allocation2 + $0x108] sm:$0xff]  ;;  %v122_v10 = vld [vmem:[#allocation2 + $0x118] sm:$0xff]  ;;  %v117_v12 = vld [vmem:[#allocation2 + $0xf0] sm:$0xff]  ;;  %vm2151_vm1 = vmmov 0   ;;  %vm745_vm2 = vcmask 261120  }
  0x1e   :  { %64 = vadd.xlane.f32.xlu0 %v63_v1  ;;  %219 = vmatprep.mubr.f32.mxu0 %v2150_v3  ;;  %v118_v11 = vld [vmem:[#allocation2 + $0xf8] sm:$0xff]  ;;  %v119_v13 = vld [vmem:[#allocation2 + $0x100] sm:$0xff]  ;;  %v116_v16 = vld [vmem:[#allocation2 + $0xe8] sm:$0xff]  ;;  %v2234_v49 = vshrl.u32 %v77_v48, 7  ;;  %s2154_s26 = smov 12   ;;  %vm950_vm3 = vcmask 1043456  }
  0x1f   :  { %164 = vmatpush1.msra.mxu0 %v120_v9  ;;  %1906 = vmatpush3.msra.mxu1 %v122_v10  ;;  %v115_v14 = vld [vmem:[#allocation2 + $0xe0] sm:$0xff]  ;;  %v114_v15 = vld [vmem:[#allocation2 + $0xd8] sm:$0xff]  ;;  %v112_v17 = vld [vmem:[#allocation2 + $0xc8] sm:$0xff]  ;;  %vm947_vm4 = vcmask 97280  }
  0x20   :  { %165 = vmatprep.subr.mxu0 %v118_v11  ;;  %1907 = vmatprep.subr.mxu1 %v2150_v3  ;;  %v111_v18 = vld [vmem:[#allocation2 + $0xc0] sm:$0xff]  ;;  %v113_v19 = vld [vmem:[#allocation2 + $0xd0] sm:$0xff]  ;;  %v108_v21 = vld [vmem:[#allocation2 + $0xa8] sm:$0xff]  ;;  %v2237_v50 = vsub.s32 0, %v2234_v49  ;;  %v2243_v52 = vsub.s32 1, %v2234_v49 }
  0x21   :  { %166 = vmatpush1.msra.mxu0 %v117_v12  ;;  %1908 = vmatpush3.msra.mxu1 %v119_v13  ;;  %v109_v20 = vld [vmem:[#allocation2 + $0xb0] sm:$0xff]  ;;  %v110_v22 = vld [vmem:[#allocation2 + $0xb8] sm:$0xff]  ;;  %v107_v25 = vld [vmem:[#allocation2 + $0xa0] sm:$0xff] }
  0x22   :  { %167 = vmatprep.subr.mxu0 %v115_v14  ;;  %1909 = vmatprep.subr.mxu1 %v2150_v3  ;;  %v106_v23 = vld [vmem:[#allocation2 + $0x98] sm:$0xff]  ;;  %v105_v24 = vld [vmem:[#allocation2 + $0x90] sm:$0xff]  ;;  %v103_v26 = vld [vmem:[#allocation2 + $0x80] sm:$0xff] }
  0x23   :  { %168 = vmatpush1.msra.mxu0 %v114_v15  ;;  %1910 = vmatpush3.msra.mxu1 %v116_v16  ;;  %v102_v27 = vld [vmem:[#allocation2 + $0x78] sm:$0xff]  ;;  %v104_v28 = vld [vmem:[#allocation2 + $0x88] sm:$0xff]  ;;  %v99_v30 = vld [vmem:[#allocation2 + $0x60] sm:$0xff] }
  0x24   :  { %169 = vmatprep.subr.mxu0 %v112_v17  ;;  %1911 = vmatprep.subr.mxu1 %v2150_v3  ;;  %v100_v29 = vld [vmem:[#allocation2 + $0x68] sm:$0xff]  ;;  %v101_v31 = vld [vmem:[#allocation2 + $0x70] sm:$0xff]  ;;  %v98_v34 = vld [vmem:[#allocation2 + $0x58] sm:$0xff] }
  0x25   :  { %170 = vmatpush1.msra.mxu0 %v111_v18  ;;  %1912 = vmatpush3.msra.mxu1 %v113_v19  ;;  %v97_v32 = vld [vmem:[#allocation2 + $0x50] sm:$0xff]  ;;  %v96_v33 = vld [vmem:[#allocation2 + $0x48] sm:$0xff]  ;;  %v94_v35 = vld [vmem:[#allocation2 + $0x38] sm:$0xff] }
  0x26   :  { %171 = vmatprep.subr.mxu0 %v109_v20  ;;  %1913 = vmatprep.subr.mxu1 %v2150_v3  ;;  %v93_v36 = vld [vmem:[#allocation2 + $0x30] sm:$0xff]  ;;  %v95_v37 = vld [vmem:[#allocation2 + $0x40] sm:$0xff]  ;;  %v90_v39 = vld [vmem:[#allocation2 + $0x18] sm:$0xff] }
  0x27   :  { %172 = vmatpush1.msra.mxu0 %v108_v21  ;;  %1914 = vmatpush3.msra.mxu1 %v110_v22  ;;  %v91_v38 = vld [vmem:[#allocation2 + $0x20] sm:$0xff]  ;;  %v92_v40 = vld [vmem:[#allocation2 + $0x28] sm:$0xff]  ;;  %v89_v43 = vld [vmem:[#allocation2 + $0x10] sm:$0xff] }
  0x28   :  { %173 = vmatprep.subr.mxu0 %v106_v23  ;;  %1915 = vmatprep.subr.mxu1 %v2150_v3  ;;  %v88_v41 = vld [vmem:[#allocation2 + $0x8] sm:$0xff]  ;;  %v87_v42 = vld [vmem:[#allocation2] sm:$0xff]  ;;  %v331_v44 = vld [vmem:[#allocation2 + $0x230] sm:$0xff] }
  0x29   :  { %174 = vmatpush1.msra.mxu0 %v105_v24  ;;  %1916 = vmatpush3.msra.mxu1 %v107_v25  ;;  %v59_v51 = vld [vmem:[%s2691_s7] sm:$0x3f]  ;;  %v330_v59 = vld [vmem:[#allocation2 + $0x228] sm:$0xff]  ;;  %v332_v60 = vld [vmem:[#allocation2 + $0x238] sm:$0xff] }
  0x2a   :  { %175 = vmatprep.subr.mxu0 %v103_v26  ;;  %1917 = vmatprep.subr.mxu1 %v2150_v3  ;;  %v80_v53 = vrot.slane %v59_v51, %v2237_v50  ;;  %v85_v56 = vrot.slane %v59_v51, %v2243_v52  ;;  %v328_v61 = vld [vmem:[#allocation2 + $0x218] sm:$0xff]  ;;  %v327_v62 = vld [vmem:[#allocation2 + $0x210] sm:$0xff]  ;;  %v329_v63 = vld [vmem:[#allocation2 + $0x220] sm:$0xff] }
  0x2b   :  { %176 = vmatpush1.msra.mxu0 %v102_v27  ;;  %1918 = vmatpush3.msra.mxu1 %v104_v28  ;;  %v324_v1 = vld [vmem:[#allocation2 + $0x1f8] sm:$0xff]  ;;  %v326_v2 = vld [vmem:[#allocation2 + $0x208] sm:$0xff]  ;;  %v315_v11 = vld [vmem:[#allocation2 + $0x1b0] sm:$0xff] }
  0x2c   :  { %177 = vmatprep.subr.mxu0 %v100_v29  ;;  %1919 = vmatprep.subr.mxu1 %v2150_v3  ;;  %v320_v9 = vld [vmem:[#allocation2 + $0x1d8] sm:$0xff]  ;;  %v317_v12 = vld [vmem:[#allocation2 + $0x1c0] sm:$0xff]  ;;  %v314_v15 = vld [vmem:[#allocation2 + $0x1a8] sm:$0xff] }
  0x2d   :  { %178 = vmatpush1.msra.mxu0 %v99_v30  ;;  %1920 = vmatpush3.msra.mxu1 %v101_v31  ;;  %v316_v10 = vld [vmem:[#allocation2 + $0x1b8] sm:$0xff]  ;;  %v313_v13 = vld [vmem:[#allocation2 + $0x1a0] sm:$0xff]  ;;  %v310_v16 = vld [vmem:[#allocation2 + $0x188] sm:$0xff] }
  0x2e   :  { %179 = vmatprep.subr.mxu0 %v97_v32  ;;  %1921 = vmatprep.subr.mxu1 %v2150_v3  ;;  %v312_v14 = vld [vmem:[#allocation2 + $0x198] sm:$0xff]  ;;  %v309_v17 = vld [vmem:[#allocation2 + $0x180] sm:$0xff]  ;;  %v311_v18 = vld [vmem:[#allocation2 + $0x190] sm:$0xff] }
  0x2f   :  { %180 = vmatpush1.msra.mxu0 %v96_v33  ;;  %1922 = vmatpush3.msra.mxu1 %v98_v34  ;;  %v307_v19 = vld [vmem:[#allocation2 + $0x170] sm:$0xff]  ;;  %v306_v20 = vld [vmem:[#allocation2 + $0x168] sm:$0xff]  ;;  %v308_v21 = vld [vmem:[#allocation2 + $0x178] sm:$0xff] }
  0x30   :  { %181 = vmatprep.subr.mxu0 %v94_v35  ;;  %1923 = vmatprep.subr.mxu1 %v2150_v3  ;;  %v304_v22 = vld [vmem:[#allocation2 + $0x158] sm:$0xff]  ;;  %v303_v23 = vld [vmem:[#allocation2 + $0x150] sm:$0xff]  ;;  %v305_v24 = vld [vmem:[#allocation2 + $0x160] sm:$0xff] }
  0x31   :  { %182 = vmatpush1.msra.mxu0 %v93_v36  ;;  %1924 = vmatpush3.msra.mxu1 %v95_v37  ;;  %v301_v25 = vld [vmem:[#allocation2 + $0x140] sm:$0xff]  ;;  %v300_v26 = vld [vmem:[#allocation2 + $0x138] sm:$0xff]  ;;  %v302_v27 = vld [vmem:[#allocation2 + $0x148] sm:$0xff] }
  0x32   :  { %183 = vmatprep.subr.mxu0 %v91_v38  ;;  %1925 = vmatprep.subr.mxu1 %v2150_v3  ;;  %v298_v28 = vld [vmem:[#allocation2 + $0x128] sm:$0xff]  ;;  %v297_v29 = vld [vmem:[#allocation2 + $0x120] sm:$0xff]  ;;  %v299_v30 = vld [vmem:[#allocation2 + $0x130] sm:$0xff] }
  0x33   :  { %184 = vmatpush1.msra.mxu0 %v90_v39  ;;  %1926 = vmatpush3.msra.mxu1 %v92_v40  ;;  %v536_v31 = vld [vmem:[#allocation2 + $0x350] sm:$0xff]  ;;  %v535_v32 = vld [vmem:[#allocation2 + $0x348] sm:$0xff]  ;;  %v537_v33 = vld [vmem:[#allocation2 + $0x358] sm:$0xff] }
  0x34   :  { %185 = vmatprep.subr.mxu0 %v88_v41  ;;  %1927 = vmatprep.subr.mxu1 %v2150_v3  ;;  %v533_v34 = vld [vmem:[#allocation2 + $0x338] sm:$0xff]  ;;  %v532_v35 = vld [vmem:[#allocation2 + $0x330] sm:$0xff]  ;;  %v534_v36 = vld [vmem:[#allocation2 + $0x340] sm:$0xff] }
  0x35   :  { %186 = vmatpush1.msra.mxu0 %v87_v42  ;;  %1928 = vmatpush3.msra.mxu1 %v89_v43  ;;  %v530_v37 = vld [vmem:[#allocation2 + $0x320] sm:$0xff]  ;;  %v529_v38 = vld [vmem:[#allocation2 + $0x318] sm:$0xff]  ;;  %v531_v39 = vld [vmem:[#allocation2 + $0x328] sm:$0xff] }
  0x36   :  { %1929 = vmatprep.mubr.msk.f32.mxu1 %vm2151_vm1, %v2150_v3  ;;  %368 = vmatprep.subr.mxu0 %v331_v44  ;;  %v527_v40 = vld [vmem:[#allocation2 + $0x308] sm:$0xff]  ;;  %v526_v41 = vld [vmem:[#allocation2 + $0x300] sm:$0xff]  ;;  %v528_v42 = vld [vmem:[#allocation2 + $0x310] sm:$0xff] }
  0x37   :  { %1932 = vmatprep.subr.mxu1 %v2150_v3  ;;  %v524_v43 = vld [vmem:[#allocation2 + $0x2f0] sm:$0xff]  ;;  %v523_v44 = vld [vmem:[#allocation2 + $0x2e8] sm:$0xff]  ;;  %v522_v48 = vld [vmem:[#allocation2 + $0x2e0] sm:$0xff] }
  0x38   :  { %v518_v51 = vld [vmem:[#allocation2 + $0x2c0] sm:$0xff] }
  0xa7   :  { %v65_v4 = vpop.xlane.xlu0 %64 }
  0xa8   :  { %v67_v5 = vmul.f32 0.010416667, %v65_v4  ;;  %v322_v4 = vld [vmem:[#allocation2 + $0x1e8] sm:$0xff] }
  0xaa   :  { %v2215_v6 = vsub.f32 %v58_v0, %v67_v5  ;;  %v325_v0 = vld [vmem:[#allocation2 + $0x200] sm:$0xff] }
  0xab   :  { %v321_v5 = vld [vmem:[#allocation2 + $0x1e0] sm:$0xff] }
  0xac   :  { %v69_v7 = vmul.f32 %v2215_v6, %v2215_v6 }
  0xae   :  { %v70_v8 = vsel %vm62_vm0, %v69_v7, 0.0  ;;  %v319_v7 = vld [vmem:[#allocation2 + $0x1d0] sm:$0xff] }
  0xaf   :  { %71 = vadd.xlane.f32.xlu0 %v70_v8  ;;  %v318_v8 = vld [vmem:[#allocation2 + $0x1c8] sm:$0xff] }
 0x138   :  { %v72_v45 = vpop.xlane.xlu0 %71 }
 0x139   :  { %v73_v46 = vmul.f32 0.010416667, %v72_v45  ;;  %v525_v45 = vld [vmem:[#allocation2 + $0x2f8] sm:$0xff] }
 0x13b   :  { %v74_v47 = vadd.f32 1e-05, %v73_v46  ;;  %v521_v46 = vld [vmem:[#allocation2 + $0x2d8] sm:$0xff] }
 0x13d   :  { %2066 = vrsqrt.f32 %v74_v47  ;;  %v520_v47 = vld [vmem:[#allocation2 + $0x2d0] sm:$0xff] }
 0x14a   :  { %v2067_v54 = vpop.eup %2066 }
 0x14b   :  { %v76_v55 = vmul.f32 %v2067_v54, %v2215_v6  ;;  %v323_v6 = vld [vmem:[#allocation2 + $0x1f0] sm:$0xff]  ;;  %v519_v54 = vld [vmem:[#allocation2 + $0x2c8] sm:$0xff] }
 0x14d   :  { %v81_v57 = vmul.f32 %v80_v53, %v76_v55  ;;  %v517_v53 = vld [vmem:[#allocation2 + $0x2b8] sm:$0xff]  ;;  %v515_v55 = vld [vmem:[#allocation2 + $0x2a8] sm:$0xff] }
 0x14f   :  { %v2248_v58 = vadd.f32 %v85_v56, %v81_v57  ;;  %v514_v56 = vld [vmem:[#allocation2 + $0x2a0] sm:$0xff]  ;;  %v516_v57 = vld [vmem:[#allocation2 + $0x2b0] sm:$0xff] }
 0x151   :  { %1740 = vmatmul.mubr.msk.f32.vlgmr.msra.gmra.mxu0 %vm62_vm0, %v2248_v58  ;;  %1930 = vmatmul.mubr.msk.f32.vlgmr.msra.gmra.mxu1 %vm62_vm0, %v2248_v58 }
 0x152   :  { %369 = vmatpush1.msra.mxu0 %v330_v59  ;;  %1933 = vmatpush3.msra.mxu1 %v332_v60  ;;  %v512_v59 = vld [vmem:[#allocation2 + $0x290] sm:$0xff]  ;;  %v511_v60 = vld [vmem:[#allocation2 + $0x288] sm:$0xff] }
 0x153   :  { %370 = vmatprep.subr.mxu0 %v328_v61  ;;  %1934 = vmatprep.subr.mxu1 %v2150_v3  ;;  %v513_v61 = vld [vmem:[#allocation2 + $0x298] sm:$0xff] }
 0x154   :  { %371 = vmatpush1.msra.mxu0 %v327_v62  ;;  %1935 = vmatpush3.msra.mxu1 %v329_v63  ;;  %v509_v62 = vld [vmem:[#allocation2 + $0x278] sm:$0xff]  ;;  %v508_v63 = vld [vmem:[#allocation2 + $0x270] sm:$0xff] }
 0x155   :  { %372 = vmatprep.subr.mxu0 %v325_v0  ;;  %1936 = vmatprep.subr.mxu1 %v2150_v3  ;;  %v510_v0 = vld [vmem:[#allocation2 + $0x280] sm:$0xff] }
 0x156   :  { %373 = vmatpush1.msra.mxu0 %v324_v1  ;;  %1937 = vmatpush3.msra.mxu1 %v326_v2  ;;  %v506_v1 = vld [vmem:[#allocation2 + $0x260] sm:$0xff]  ;;  %v505_v2 = vld [vmem:[#allocation2 + $0x258] sm:$0xff] }
 0x157   :  { %374 = vmatprep.subr.mxu0 %v322_v4  ;;  %1938 = vmatprep.subr.mxu1 %v2150_v3  ;;  %v507_v4 = vld [vmem:[#allocation2 + $0x268] sm:$0xff] }
 0x158   :  { %375 = vmatpush1.msra.mxu0 %v321_v5  ;;  %1939 = vmatpush3.msra.mxu1 %v323_v6  ;;  %v503_v5 = vld [vmem:[#allocation2 + $0x248] sm:$0xff]  ;;  %v502_v6 = vld [vmem:[#allocation2 + $0x240] sm:$0xff] }
 0x159   :  { %376 = vmatprep.subr.mxu0 %v319_v7  ;;  %1940 = vmatprep.subr.mxu1 %v2150_v3  ;;  %v504_v7 = vld [vmem:[#allocation2 + $0x250] sm:$0xff] }
 0x15a   :  { %377 = vmatpush1.msra.mxu0 %v318_v8  ;;  %1941 = vmatpush3.msra.mxu1 %v320_v9  ;;  %v740_v8 = vld [vmem:[%s2687_s3 + $0xf8] sm:$0xff] }
 0x15b   :  { %378 = vmatprep.subr.mxu0 %v316_v10  ;;  %1942 = vmatprep.subr.mxu1 %v2150_v3  ;;  %v724_v9 = vld [vmem:[%s2687_s3 + $0x78] sm:$0xff]  ;;  %v739_v10 = vld [vmem:[%s2687_s3 + $0xf0] sm:$0xff] }
 0x15c   :  { %379 = vmatpush1.msra.mxu0 %v315_v11  ;;  %1943 = vmatpush3.msra.mxu1 %v317_v12  ;;  %v738_v11 = vld [vmem:[%s2687_s3 + $0xe8] sm:$0xff] }
 0x15d   :  { %380 = vmatprep.subr.mxu0 %v313_v13  ;;  %1944 = vmatprep.subr.mxu1 %v2150_v3  ;;  %v722_v12 = vld [vmem:[%s2687_s3 + $0x68] sm:$0xff]  ;;  %v737_v13 = vld [vmem:[%s2687_s3 + $0xe0] sm:$0xff] }
 0x15e   :  { %381 = vmatpush1.msra.mxu0 %v312_v14  ;;  %1945 = vmatpush3.msra.mxu1 %v314_v15  ;;  %v721_v14 = vld [vmem:[%s2687_s3 + $0x60] sm:$0xff]  ;;  %v736_v15 = vld [vmem:[%s2687_s3 + $0xd8] sm:$0xff] }
 0x15f   :  { %382 = vmatprep.subr.mxu0 %v310_v16  ;;  %1946 = vmatprep.subr.mxu1 %v2150_v3  ;;  %v720_v16 = vld [vmem:[%s2687_s3 + $0x58] sm:$0xff] }
 0x160   :  { %383 = vmatpush1.msra.mxu0 %v309_v17  ;;  %1947 = vmatpush3.msra.mxu1 %v311_v18  ;;  %v735_v17 = vld [vmem:[%s2687_s3 + $0xd0] sm:$0xff] }
 0x161   :  { %384 = vmatprep.subr.mxu0 %v307_v19  ;;  %1948 = vmatprep.subr.mxu1 %v2150_v3  ;;  %v719_v18 = vld [vmem:[%s2687_s3 + $0x50] sm:$0xff]  ;;  %v744_v19 = vld [vmem:[%s2687_s3 + $0x118] sm:$0xff] }
 0x162   :  { %385 = vmatpush1.msra.mxu0 %v306_v20  ;;  %1949 = vmatpush3.msra.mxu1 %v308_v21  ;;  %v734_v20 = vld [vmem:[%s2687_s3 + $0xc8] sm:$0xff] }
 0x163   :  { %386 = vmatprep.subr.mxu0 %v304_v22  ;;  %1950 = vmatprep.subr.mxu1 %v2150_v3  ;;  %v718_v21 = vld [vmem:[%s2687_s3 + $0x48] sm:$0xff]  ;;  %v733_v22 = vld [vmem:[%s2687_s3 + $0xc0] sm:$0xff] }
 0x164   :  { %387 = vmatpush1.msra.mxu0 %v303_v23  ;;  %1951 = vmatpush3.msra.mxu1 %v305_v24  ;;  %v717_v23 = vld [vmem:[%s2687_s3 + $0x40] sm:$0xff]  ;;  %v732_v24 = vld [vmem:[%s2687_s3 + $0xb8] sm:$0xff] }
 0x165   :  { %388 = vmatprep.subr.mxu0 %v301_v25  ;;  %1952 = vmatprep.subr.mxu1 %v2150_v3  ;;  %v716_v25 = vld [vmem:[%s2687_s3 + $0x38] sm:$0xff] }
 0x166   :  { %389 = vmatpush1.msra.mxu0 %v300_v26  ;;  %1953 = vmatpush3.msra.mxu1 %v302_v27  ;;  %v731_v26 = vld [vmem:[%s2687_s3 + $0xb0] sm:$0xff] }
 0x167   :  { %390 = vmatprep.subr.mxu0 %v298_v28  ;;  %1954 = vmatprep.subr.mxu1 %v2150_v3  ;;  %v715_v27 = vld [vmem:[%s2687_s3 + $0x30] sm:$0xff]  ;;  %v730_v28 = vld [vmem:[%s2687_s3 + $0xa8] sm:$0xff] }
 0x168   :  { %391 = vmatpush1.msra.mxu0 %v297_v29  ;;  %424 = vmatprep.mubr.f32.mxu0 %v2150_v3  ;;  %v714_v29 = vld [vmem:[%s2687_s3 + $0x28] sm:$0xff] }
 0x169   :  { %1955 = vmatpush3.msra.mxu1 %v299_v30  ;;  %1956 = vmatprep.mubr.msk.f32.mxu1 %vm2151_vm1, %v2150_v3  ;;  %v729_v30 = vld [vmem:[%s2687_s3 + $0xa0] sm:$0xff] }
 0x16a   :  { %1742 = vmatmul.mubr.msk.f32.vlgmr.msra.gmra.mxu0 %vm62_vm0, %v2248_v58  ;;  %1957 = vmatmul.mubr.msk.f32.vlgmr.msra.gmra.mxu1 %vm62_vm0, %v2248_v58 }
 0x16b   :  { %573 = vmatprep.subr.mxu0 %v536_v31  ;;  %1959 = vmatprep.subr.mxu1 %v2150_v3  ;;  %v713_v31 = vld [vmem:[%s2687_s3 + $0x20] sm:$0xff] }
 0x16c   :  { %574 = vmatpush1.msra.mxu0 %v535_v32  ;;  %1960 = vmatpush3.msra.mxu1 %v537_v33  ;;  %v728_v32 = vld [vmem:[%s2687_s3 + $0x98] sm:$0xff]  ;;  %v743_v33 = vld [vmem:[%s2687_s3 + $0x110] sm:$0xff] }
 0x16d   :  { %575 = vmatprep.subr.mxu0 %v533_v34  ;;  %1961 = vmatprep.subr.mxu1 %v2150_v3  ;;  %v712_v34 = vld [vmem:[%s2687_s3 + $0x18] sm:$0xff] }
 0x16e   :  { %576 = vmatpush1.msra.mxu0 %v532_v35  ;;  %1962 = vmatpush3.msra.mxu1 %v534_v36  ;;  %v727_v35 = vld [vmem:[%s2687_s3 + $0x90] sm:$0xff]  ;;  %v742_v36 = vld [vmem:[%s2687_s3 + $0x108] sm:$0xff] }
 0x16f   :  { %577 = vmatprep.subr.mxu0 %v530_v37  ;;  %1963 = vmatprep.subr.mxu1 %v2150_v3  ;;  %v711_v37 = vld [vmem:[%s2687_s3 + $0x10] sm:$0xff] }
 0x170   :  { %578 = vmatpush1.msra.mxu0 %v529_v38  ;;  %1964 = vmatpush3.msra.mxu1 %v531_v39  ;;  %v726_v38 = vld [vmem:[%s2687_s3 + $0x88] sm:$0xff]  ;;  %v741_v39 = vld [vmem:[%s2687_s3 + $0x100] sm:$0xff] }
 0x171   :  { %579 = vmatprep.subr.mxu0 %v527_v40  ;;  %1965 = vmatprep.subr.mxu1 %v2150_v3  ;;  %v710_v40 = vld [vmem:[%s2687_s3 + $0x8] sm:$0xff] }
 0x172   :  { %580 = vmatpush1.msra.mxu0 %v526_v41  ;;  %1966 = vmatpush3.msra.mxu1 %v528_v42  ;;  %v725_v41 = vld [vmem:[%s2687_s3 + $0x80] sm:$0xff] }
 0x173   :  { %581 = vmatprep.subr.mxu0 %v524_v43  ;;  %1967 = vmatprep.subr.mxu1 %v2150_v3  ;;  %v709_v42 = vld [vmem:[%s2687_s3] sm:$0xff] }
 0x174   :  { %582 = vmatpush1.msra.mxu0 %v523_v44  ;;  %1968 = vmatpush3.msra.mxu1 %v525_v45  ;;  %v61_v45 = vld [vmem:[%s2686_s2 + $0x8] sm:$0x7] }
 0x175   :  { %583 = vmatprep.subr.mxu0 %v521_v46  ;;  %1969 = vmatprep.subr.mxu1 %v2150_v3  ;;  %v131_v46 = vsub.s32 4, %v2234_v49 }
 0x176   :  { %584 = vmatpush1.msra.mxu0 %v520_v47  ;;  %1970 = vmatpush3.msra.mxu1 %v522_v48  ;;  %v339_v47 = vsub.s32 5, %v2234_v49  ;;  %v2413_v48 = vld [vmem:[%s2686_s2] sm:$0x77]  ;;  %s2152_s2 = smov 116  }
 0x177   :  { %585 = vmatprep.subr.mxu0 %v518_v51  ;;  %1971 = vmatprep.subr.mxu1 %v2150_v3  ;;  %v136_v51 = vrot.slane %v61_v45, %v2237_v50 }
 0x178   :  { %586 = vmatpush1.msra.mxu0 %v517_v53  ;;  %1972 = vmatpush3.msra.mxu1 %v519_v54  ;;  %v344_v53 = vrot.slane %v61_v45, %v2243_v52 }
 0x179   :  { %587 = vmatprep.subr.mxu0 %v515_v55  ;;  %1973 = vmatprep.subr.mxu1 %v2150_v3  ;;  %v336_v55 = vrot.slane %v2413_v48, %v2243_v52 }
 0x17a   :  { %588 = vmatpush1.msra.mxu0 %v514_v56  ;;  %1974 = vmatpush3.msra.mxu1 %v516_v57  ;;  %v132_v56 = vrot.slane %v2413_v48, %v131_v46  ;;  %v340_v57 = vrot.slane %v2413_v48, %v339_v47 }
 0x17b   :  { %589 = vmatprep.subr.mxu0 %v512_v59  ;;  %1975 = vmatprep.subr.mxu1 %v2150_v3  ;;  %v128_v59 = vrot.slane %v2413_v48, %v2237_v50 }
 0x17c   :  { %590 = vmatpush1.msra.mxu0 %v511_v60  ;;  %1976 = vmatpush3.msra.mxu1 %v513_v61  ;;  %v151_v60 = vrot.slane %v136_v51, %v2237_v50  ;;  %v359_v61 = vrot.slane %v344_v53, %v2243_v52  ;;  %v942_v53 = vld [vmem:[#allocation5 + $0x50] sm:$0xf] }
 0x17d   :  { %591 = vmatprep.subr.mxu0 %v509_v62  ;;  %1977 = vmatprep.subr.mxu1 %v2150_v3 }
 0x17e   :  { %592 = vmatpush1.msra.mxu0 %v508_v63  ;;  %1978 = vmatpush3.msra.mxu1 %v510_v0  ;;  %v351_v63 = vrot.slane %v336_v55, %v2243_v52  ;;  %v147_v0 = vrot.slane %v132_v56, %v2237_v50  ;;  %v939_v55 = vld [vmem:[#allocation5 + $0x38] sm:$0xff]  ;;  %v938_v56 = vld [vmem:[#allocation5 + $0x30] sm:$0xff] }
 0x17f   :  { %593 = vmatprep.subr.mxu0 %v506_v1  ;;  %1979 = vmatprep.subr.mxu1 %v2150_v3  ;;  %v355_v1 = vrot.slane %v340_v57, %v2243_v52 }
 0x180   :  { %594 = vmatpush1.msra.mxu0 %v505_v2  ;;  %1980 = vmatpush3.msra.mxu1 %v507_v4  ;;  %v143_v2 = vrot.slane %v128_v59, %v2237_v50  ;;  %v2436_v50 = vsub.s32 2, %v2234_v49 }
 0x181   :  { %595 = vmatprep.subr.mxu0 %v503_v5  ;;  %1981 = vmatprep.subr.mxu1 %v2150_v3 }
 0x182   :  { %596 = vmatpush1.msra.mxu0 %v502_v6  ;;  %629 = vmatprep.mubr.f32.mxu0 %v2150_v3  ;;  %v549_v52 = vrot.slane %v61_v45, %v2436_v50 }
 0x183   :  { %1982 = vmatpush3.msra.mxu1 %v504_v7  ;;  %1983 = vmatprep.mubr.msk.f32.mxu1 %vm2151_vm1, %v2150_v3 }
 0x184   :  { %1744 = vmatmul.mubr.msk.f32.vlgmr.msra.gmra.mxu0 %vm62_vm0, %v2248_v58  ;;  %1984 = vmatmul.mubr.msk.f32.vlgmr.msra.gmra.mxu1 %vm62_vm0, %v2248_v58  ;;  %v723_v58 = vld [vmem:[%s2687_s3 + $0x70] sm:$0xff]  ;;  %s2153_s3 = smov 104  }
 0x185   :  { %1803 = vmatprep.subr.mxu0 %v740_v8  ;;  %1986 = vmatprep.subr.mxu1 %v2150_v3 }
 0x186   :  { %1994 = vmatprep.mubr.msk.f32.mxu1 %vm2151_vm1, %v2150_v3  ;;  %1804 = vmatpush3.msra.mxu0 %v724_v9 }
 0x187   :  { %1805 = vmatprep.subr.mxu0 %v739_v10  ;;  %1987 = vmatpush3.msra.mxu1 %v744_v19 }
 0x188   :  { %1806 = vmatpush3.msra.mxu0 %v723_v58  ;;  %1988 = vmatprep.subr.mxu1 %v2150_v3 }
 0x189   :  { %1807 = vmatprep.subr.mxu0 %v738_v11  ;;  %1989 = vmatpush3.msra.mxu1 %v743_v33 }
 0x18a   :  { %1808 = vmatpush3.msra.mxu0 %v722_v12  ;;  %1990 = vmatprep.subr.mxu1 %v2150_v3 }
 0x18b   :  { %1809 = vmatprep.subr.mxu0 %v737_v13  ;;  %1991 = vmatpush3.msra.mxu1 %v742_v36 }
 0x18c   :  { %1810 = vmatpush3.msra.mxu0 %v721_v14  ;;  %1992 = vmatprep.subr.mxu1 %v2150_v3 }
 0x18d   :  { %1811 = vmatprep.subr.mxu0 %v736_v15  ;;  %1993 = vmatpush3.msra.mxu1 %v741_v39 }
 0x18e   :  { %1812 = vmatpush3.msra.mxu0 %v720_v16  ;;  %v564_v16 = vrot.slane %v549_v52, %v2436_v50  ;;  %1747 = vmatprep.subr.msk.mxu1 %vm950_vm3, %v942_v53  ;;  %v928_v52 = vld [vmem:[#allocation5 + $0x10] sm:$0xff]  ;;  %v1443_v53 = vld [vmem:[%s2689_s5 + $0x88] sm:$0xff] }
 0x18f   :  { %1813 = vmatprep.subr.mxu0 %v735_v17 }
 0x190   :  { %1814 = vmatpush3.msra.mxu0 %v719_v18 }
 0x191   :  { %1815 = vmatprep.subr.mxu0 %v734_v20 }
 0x192   :  { %1816 = vmatpush3.msra.mxu0 %v718_v21 }
 0x193   :  { %1817 = vmatprep.subr.mxu0 %v733_v22 }
 0x194   :  { %1818 = vmatpush3.msra.mxu0 %v717_v23 }
 0x195   :  { %1819 = vmatprep.subr.mxu0 %v732_v24 }
 0x196   :  { %1820 = vmatpush3.msra.mxu0 %v716_v25 }
 0x197   :  { %1821 = vmatprep.subr.mxu0 %v731_v26 }
 0x198   :  { %1822 = vmatpush3.msra.mxu0 %v715_v27 }
 0x199   :  { %1823 = vmatprep.subr.mxu0 %v730_v28 }
 0x19a   :  { %1824 = vmatpush3.msra.mxu0 %v714_v29 }
 0x19b   :  { %1825 = vmatprep.subr.mxu0 %v729_v30 }
 0x19c   :  { %1826 = vmatpush3.msra.mxu0 %v713_v31 }
 0x19d   :  { %1827 = vmatprep.subr.mxu0 %v728_v32 }
 0x19e   :  { %1828 = vmatpush3.msra.mxu0 %v712_v34 }
 0x19f   :  { %1829 = vmatprep.subr.mxu0 %v727_v35 }
 0x1a0   :  { %1830 = vmatpush3.msra.mxu0 %v711_v37 }
 0x1a1   :  { %1831 = vmatprep.subr.mxu0 %v726_v38 }
 0x1a2   :  { %1832 = vmatpush3.msra.mxu0 %v710_v40 }
 0x1a3   :  { %1833 = vmatprep.subr.mxu0 %v725_v41 }
 0x1a4   :  { %1834 = vmatpush3.msra.mxu0 %v709_v42 }
 0x211   :  { %v292_v43 = vpop.f32.mrf.mxu1  ;;  %v221_v54 = vpop.f32.mrf.mxu0 }
 0x212   :  { %v293_v6 = vadd.f32 %v292_v43, %v151_v60  ;;  %v222_v13 = vadd.f32 %v221_v54, %v143_v2  ;;  %v941_v54 = vld [vmem:[#allocation5 + $0x48] sm:$0xf]  ;;  %v1456_v2 = vld [vmem:[%s2689_s5 + $0xf0] sm:$0xff] }
 0x213   :  { %v1931_v44 = vpop.f32.mrf.mxu1  ;;  %v223_v62 = vpop.f32.mrf.mxu0 }
 0x214   :  { %v224_v58 = vadd.f32 %v223_v62, %v147_v0  ;;  %v1457_v0 = vld [vmem:[%s2689_s5 + $0xf8] sm:$0xff] }
 0x215   :  { %1852 = vmatprep.subr.mxu0 %v1457_v0 }
 0x22a   :  { %v426_v4 = vpop.f32.mrf.mxu0  ;;  %v497_v5 = vpop.f32.mrf.mxu1 }
 0x22b   :  { %v498_v7 = vadd.f32 %v497_v5, %v359_v61  ;;  %v427_v8 = vadd.f32 %v426_v4, %v351_v63  ;;  %v1440_v4 = vld [vmem:[%s2689_s5 + $0x70] sm:$0xff]  ;;  %v1455_v5 = vld [vmem:[%s2689_s5 + $0xe8] sm:$0xff] }
 0x22c   :  { %v428_v9 = vpop.f32.mrf.mxu0  ;;  %v1958_v10 = vpop.f32.mrf.mxu1 }
 0x22d   :  { %v708_v11 = vmul.f32 %v498_v7, %v293_v6  ;;  %v429_v12 = vadd.f32 %v428_v9, %v355_v1  ;;  %v706_v15 = vmul.f32 %v427_v8, %v222_v13  ;;  %v1441_v1 = vld [vmem:[%s2689_s5 + $0x78] sm:$0xff]  ;;  %v1439_v6 = vld [vmem:[%s2689_s5 + $0x68] sm:$0xff]  ;;  %v1454_v7 = vld [vmem:[%s2689_s5 + $0xe0] sm:$0xff] }
 0x22e   :  { %v1438_v8 = vld [vmem:[%s2689_s5 + $0x60] sm:$0xff]  ;;  %v943_v9 = vld [vmem:[#allocation5 + $0x58] sm:$0xf]  ;;  %v927_v13 = vld [vmem:[#allocation5 + $0x8] sm:$0xff] }
 0x22f   :  { %v707_v14 = vmul.f32 %v429_v12, %v224_v58  ;;  %1995 = vmatmul.mubr.msk.f32.vlgmr.msra.gmra.mxu1 %vm745_vm2, %v708_v11  ;;  %v940_v58 = vld [vmem:[#allocation5 + $0x40] sm:$0xff]  ;;  %v929_v12 = vld [vmem:[#allocation5 + $0x18] sm:$0xf] }
 0x230   :  { %1024 = vmatprep.mubr.f32.mxu1 %v2150_v3  ;;  %1748 = vmatpush1.msk.msra.mxu1 %vm950_vm3, %v941_v54  ;;  %v930_v11 = vld [vmem:[#allocation5 + $0x20] sm:$0xf]  ;;  %v1460_v54 = vld [vmem:[%s2689_s5 + $0x110] sm:$0xff] }
 0x231   :  { %813 = vmatprep.mubr.f32.mxu0 %v707_v14  ;;  %990 = vmatprep.subr.mxu1 %v939_v55  ;;  %v926_v14 = vld [vmem:[#allocation5] sm:$0xff]  ;;  %v1427_v55 = vld [vmem:[%s2689_s5 + $0x8] sm:$0xff] }
 0x232   :  { %814 = vmatmul.mubr.f32.vlgmr.msra.gmra.mxu0 %v706_v15  ;;  %991 = vmatpush1.msra.mxu1 %v938_v56  ;;  %v931_v15 = vld [vmem:[#allocation5 + $0x28] sm:$0xf]  ;;  %v1442_v56 = vld [vmem:[%s2689_s5 + $0x80] sm:$0xff] }
 0x233   :  { %1997 = vmatprep.subr.mxu1 %v2150_v3  ;;  %1853 = vmatpush3.msra.mxu0 %v1441_v1  ;;  %v544_v1 = vsub.s32 6, %v2234_v49 }
 0x234   :  { %1854 = vmatprep.subr.mxu0 %v1456_v2 }
 0x235   :  { %1855 = vmatpush3.msra.mxu0 %v1440_v4 }
 0x236   :  { %1856 = vmatprep.subr.mxu0 %v1455_v5  ;;  %v545_v5 = vrot.slane %v2413_v48, %v544_v1 }
 0x237   :  { %1857 = vmatpush3.msra.mxu0 %v1439_v6  ;;  %v541_v6 = vrot.slane %v2413_v48, %v2436_v50 }
 0x238   :  { %1858 = vmatprep.subr.mxu0 %v1454_v7 }
 0x239   :  { %1859 = vmatpush3.msra.mxu0 %v1438_v8 }
 0x244   :  { %v702_v17 = vpop.f32.mrf.mxu1  ;;  %v2442_v20 = vpop.f32.mrf.mxu0 }
 0x245   :  { %v2440_v18 = vadd.f32 %v702_v17, %v564_v16  ;;  %v1263_v16 = vld [vmem:[#allocation5 + $0x80] sm:$0xf]  ;;  %v1262_v17 = vld [vmem:[#allocation5 + $0x78] sm:$0xf] }
 0x246   :  { %v1985_v19 = vpop.f32.mrf.mxu1  ;;  %v2444_v22 = vpop.f32.mrf.mxu0 }
 0x247   :  { %v1260_v19 = vld [vmem:[#allocation5 + $0x68] sm:$0xff] }
 0x2ef   :  { %v885_v21 = vpop.f32.mrf.mxu1 }
 0x2f1   :  { %v1996_v23 = vpop.f32.mrf.mxu1 }
 0x2f2   :  { %v1835_v24 = vpop.f32.mrf.mxu0  ;;  %v1264_v23 = vld [vmem:[#allocation5 + $0x88] sm:$0xf] }
 0x2f4   :  { %v1836_v25 = vpop.f32.mrf.mxu0 }
 0x2f5   :  { %v1837_v26 = vadd.f32 %v1836_v25, %v1835_v24  ;;  %v1261_v25 = vld [vmem:[#allocation5 + $0x70] sm:$0xff] }
 0x2f7   :  { %v886_v27 = vadd.f32 %v1837_v26, %v885_v21  ;;  %v1259_v21 = vld [vmem:[#allocation5 + $0x60] sm:$0xff]  ;;  %v1453_v26 = vld [vmem:[%s2689_s5 + $0xd8] sm:$0xff] }
 0x2f8   :  { %1860 = vmatprep.subr.mxu0 %v1453_v26 }
 0x2f9   :  { %890 = vrot.lane.b32.xlu1 %v886_v27, %s2152_s2 }
 0x2fd   :  { %894 = vrot.lane.b32.xlu1 %v886_v27, %s2153_s3 }
 0x36b   :  { %v891_v28 = vpop.permute.xlu1 %890 }
 0x36c   :  { %v893_v29 = vmax.f32 %v886_v27, %v891_v28  ;;  %v1452_v28 = vld [vmem:[%s2689_s5 + $0xd0] sm:$0xff] }
 0x36f   :  { %v895_v30 = vpop.permute.xlu1 %894 }
 0x370   :  { %v897_v31 = vmax.f32 %v893_v29, %v895_v30  ;;  %v1436_v29 = vld [vmem:[%s2689_s5 + $0x50] sm:$0xff]  ;;  %v1451_v30 = vld [vmem:[%s2689_s5 + $0xc8] sm:$0xff] }
 0x372   :  { %908 = vrot.lane.b32.xlu1 %v897_v31, %s2148_s9  ;;  %902 = vrot.lane.b32.xlu0 %v897_v31, %s2154_s26  ;;  %v898_v40 = vsub.f32 %v886_v27, %v897_v31  ;;  %v1435_v31 = vld [vmem:[%s2689_s5 + $0x48] sm:$0xff] }
 0x374   :  { %v899_v41 = vmul.f32 1.442695, %v898_v40  ;;  %v1446_v40 = vld [vmem:[%s2689_s5 + $0xa0] sm:$0xff] }
 0x3e4   :  { %v909_v32 = vpop.permute.xlu1 %908  ;;  %v903_v33 = vpop.permute.xlu0 %902 }
 0x3e5   :  { %v905_v34 = vsub.f32 %v886_v27, %v903_v33  ;;  %v911_v35 = vsub.f32 %v886_v27, %v909_v32  ;;  %v1437_v27 = vld [vmem:[%s2689_s5 + $0x58] sm:$0xff]  ;;  %v1450_v32 = vld [vmem:[%s2689_s5 + $0xc0] sm:$0xff] }
 0x3e6   :  { %1861 = vmatpush3.msra.mxu0 %v1437_v27  ;;  %v1434_v33 = vld [vmem:[%s2689_s5 + $0x40] sm:$0xff] }
 0x3e7   :  { %v906_v36 = vmul.f32 1.442695, %v905_v34  ;;  %v912_v37 = vmul.f32 1.442695, %v911_v35  ;;  %1862 = vmatprep.subr.mxu0 %v1452_v28  ;;  %v1449_v34 = vld [vmem:[%s2689_s5 + $0xb8] sm:$0xff] }
 0x3e8   :  { %1863 = vmatpush3.msra.mxu0 %v1436_v29  ;;  %v1433_v35 = vld [vmem:[%s2689_s5 + $0x38] sm:$0xff] }
 0x3e9   :  { %2068 = vpow2.f32 %v906_v36  ;;  %1864 = vmatprep.subr.mxu0 %v1451_v30  ;;  %v1448_v36 = vld [vmem:[%s2689_s5 + $0xb0] sm:$0xff] }
 0x3ea   :  { %2070 = vpow2.f32 %v912_v37  ;;  %1865 = vmatpush3.msra.mxu0 %v1435_v31  ;;  %v1432_v37 = vld [vmem:[%s2689_s5 + $0x30] sm:$0xff] }
 0x3eb   :  { %2072 = vpow2.f32 %v899_v41  ;;  %1866 = vmatprep.subr.mxu0 %v1450_v32  ;;  %v1430_v41 = vld [vmem:[%s2689_s5 + $0x20] sm:$0xff] }
 0x3ec   :  { %1867 = vmatpush3.msra.mxu0 %v1434_v33  ;;  %v2079_v32 = vld [vmem:[%s2684_s0] sm:$0xff] }
 0x3ed   :  { %1868 = vmatprep.subr.mxu0 %v1449_v34 }
 0x3ee   :  { %1869 = vmatpush3.msra.mxu0 %v1433_v35 }
 0x3ef   :  { %1870 = vmatprep.subr.mxu0 %v1448_v36 }
 0x3f0   :  { %1871 = vmatpush3.msra.mxu0 %v1432_v37 }
 0x3f6   :  { %v2069_v38 = vpop.eup %2068 }
 0x3f7   :  { %915 = vrot.lane.b32.xlu1 %v2069_v38, %s2152_s2  ;;  %v2071_v39 = vpop.eup %2070 }
 0x3f8   :  { %v2073_v43 = vpop.eup %2072 }
 0x3fb   :  { %920 = vrot.lane.b32.xlu1 %v2071_v39, %s2153_s3 }
 0x469   :  { %v916_v42 = vpop.permute.xlu1 %915 }
 0x46a   :  { %v918_v44 = vadd.f32 %v2073_v43, %v916_v42  ;;  %v1445_v42 = vld [vmem:[%s2689_s5 + $0x98] sm:$0xff] }
 0x46d   :  { %v921_v45 = vpop.permute.xlu1 %920 }
 0x46e   :  { %v923_v51 = vadd.f32 %v921_v45, %v918_v44  ;;  %v1444_v44 = vld [vmem:[%s2689_s5 + $0x90] sm:$0xff]  ;;  %v1461_v45 = vld [vmem:[%s2689_s5 + $0x118] sm:$0xff] }
 0x470   :  { %2074 = vrcp.f32 %v923_v51  ;;  %v1428_v51 = vld [vmem:[%s2689_s5 + $0x10] sm:$0xff] }
 0x47d   :  { %v2075_v57 = vpop.eup %2074 }
 0x47e   :  { %933 = vrot.lane.b32.xlu1 %v2075_v57, %s2154_s26  ;;  %v925_v59 = vmul.f32 %v2075_v57, %v2073_v43  ;;  %v1429_v43 = vld [vmem:[%s2689_s5 + $0x18] sm:$0xff] }
 0x482   :  { %1254 = vrot.lane.b32.xlu1 %v2075_v57, %s2148_s9  ;;  %v1459_v57 = vld [vmem:[%s2689_s5 + $0x108] sm:$0xff] }
 0x4f0   :  { %v934_v60 = vpop.permute.xlu1 %933 }
 0x4f1   :  { %v936_v61 = vmul.f32 %v2069_v38, %v934_v60  ;;  %v1447_v38 = vld [vmem:[%s2689_s5 + $0xa8] sm:$0xff]  ;;  %v1458_v60 = vld [vmem:[%s2689_s5 + $0x100] sm:$0xff] }
 0x4f2   :  { %1872 = vmatprep.subr.mxu0 %v1447_v38 }
 0x4f3   :  { %945 = vrot.lane.b32.xlu1 %v936_v61, %s2152_s2 }
 0x4f4   :  { %v1255_v62 = vpop.permute.xlu1 %1254 }
 0x4f5   :  { %v1257_v63 = vmul.f32 %v2071_v39, %v1255_v62  ;;  %v1431_v39 = vld [vmem:[%s2689_s5 + $0x28] sm:$0xff] }
 0x4f6   :  { %1873 = vmatpush3.msra.mxu0 %v1431_v39 }
 0x4f7   :  { %1266 = vrot.lane.b32.xlu0 %v1257_v63, %s2153_s3  ;;  %1874 = vmatprep.subr.mxu0 %v1446_v40  ;;  %v1643_v40 = vld [vmem:[%s2690_s6 + $0x50] sm:$0xff] }
 0x4f8   :  { %1875 = vmatpush3.msra.mxu0 %v1430_v41  ;;  %v1642_v41 = vld [vmem:[%s2690_s6 + $0x48] sm:$0xff] }
 0x4f9   :  { %1876 = vmatprep.subr.mxu0 %v1445_v42  ;;  %v1641_v42 = vld [vmem:[%s2690_s6 + $0x40] sm:$0xff] }
 0x4fa   :  { %1877 = vmatpush3.msra.mxu0 %v1429_v43  ;;  %v1640_v43 = vld [vmem:[%s2690_s6 + $0x38] sm:$0xff] }
 0x4fb   :  { %1878 = vmatprep.subr.mxu0 %v1444_v44  ;;  %v1639_v44 = vld [vmem:[%s2690_s6 + $0x30] sm:$0xff] }
 0x4fc   :  { %1879 = vmatpush3.msra.mxu0 %v1428_v51  ;;  %v1637_v51 = vld [vmem:[%s2690_s6 + $0x20] sm:$0xff] }
 0x4fd   :  { %1880 = vmatprep.subr.mxu0 %v1443_v53  ;;  %v1636_v53 = vld [vmem:[%s2690_s6 + $0x18] sm:$0xff] }
 0x4fe   :  { %1881 = vmatpush3.msra.mxu0 %v1427_v55  ;;  %v1634_v55 = vld [vmem:[%s2690_s6 + $0x8] sm:$0xff] }
 0x4ff   :  { %1882 = vmatprep.subr.mxu0 %v1442_v56  ;;  %v1633_v56 = vld [vmem:[%s2690_s6] sm:$0xff] }
 0x565   :  { %v946_v10 = vpop.permute.xlu1 %945 }
 0x566   :  { %1749 = vmatmul.mubr.msk.f32.vlgmr.msra.gmra.mxu1 %vm947_vm4, %v946_v10 }
 0x567   :  { %1998 = vmatpush3.msk.msra.mxu1 %vm950_vm3, %v943_v9  ;;  %2001 = vmatprep.mubr.msk.f32.mxu1 %vm2151_vm1, %v2150_v3  ;;  %v560_v9 = vrot.slane %v545_v5, %v2436_v50 }
 0x568   :  { %1999 = vmatprep.subr.mxu1 %v2150_v3 }
 0x569   :  { %2000 = vmatpush3.msra.mxu1 %v940_v58  ;;  %v1267_v24 = vpop.permute.xlu0 %1266 }
 0x56a   :  { %1752 = vmatprep.subr.msk.mxu1 %vm950_vm3, %v930_v11  ;;  %2002 = vmatmul.mubr.msk.f32.vlgmr.msra.gmra.mxu1 %vm947_vm4, %v946_v10  ;;  %v556_v10 = vrot.slane %v541_v6, %v2436_v50 }
 0x56b   :  { %1753 = vmatpush1.msk.msra.mxu1 %vm950_vm3, %v929_v12  ;;  %1177 = vmatprep.mubr.f32.mxu1 %v2150_v3 }
 0x56c   :  { %1143 = vmatprep.subr.mxu1 %v927_v13 }
 0x56d   :  { %1144 = vmatpush1.msra.mxu1 %v926_v14 }
 0x56e   :  { %2004 = vmatprep.subr.mxu1 %v2150_v3  ;;  %1754 = vmatmul.mubr.msk.f32.vlgmr.msra.gmra.mxu1 %vm947_vm4, %v925_v59 }
 0x56f   :  { %2005 = vmatpush3.msk.msra.mxu1 %vm950_vm3, %v931_v15  ;;  %2008 = vmatprep.mubr.msk.f32.mxu1 %vm2151_vm1, %v2150_v3  ;;  %v634_v15 = vadd.f32 %v2444_v22, %v560_v9 }
 0x570   :  { %2006 = vmatprep.subr.mxu1 %v2150_v3 }
 0x571   :  { %2007 = vmatpush3.msra.mxu1 %v928_v52 }
 0x572   :  { %1757 = vmatprep.subr.msk.mxu1 %vm950_vm3, %v1263_v16  ;;  %2009 = vmatmul.mubr.msk.f32.vlgmr.msra.gmra.mxu1 %vm947_vm4, %v925_v59  ;;  %v1426_v59 = vld [vmem:[%s2689_s5] sm:$0xff] }
 0x573   :  { %1758 = vmatpush1.msk.msra.mxu1 %vm950_vm3, %v1262_v17  ;;  %1343 = vmatprep.mubr.f32.mxu1 %v2150_v3  ;;  %v632_v17 = vadd.f32 %v2442_v20, %v556_v10  ;;  %v2615_v20 = vld [vmem:[%s2691_s7] sm:$0x3f] }
 0x574   :  { %1309 = vmatprep.subr.mxu1 %v1260_v19  ;;  %1883 = vmatpush3.msra.mxu0 %v1426_v59  ;;  %v1465_v27 = vrot.slane %v2615_v20, %v131_v46  ;;  %v1644_v46 = vld [vmem:[%s2690_s6 + $0x58] sm:$0xff] }
 0x575   :  { %1310 = vmatpush1.msra.mxu1 %v1259_v21 }
 0x576   :  { %1759 = vmatmul.mubr.msk.f32.vlgmr.msra.gmra.mxu1 %vm947_vm4, %v1267_v24  ;;  %2011 = vmatprep.subr.mxu1 %v2150_v3 }
 0x577   :  { %2012 = vmatpush3.msk.msra.mxu1 %vm950_vm3, %v1264_v23  ;;  %2015 = vmatprep.mubr.msk.f32.mxu1 %vm2151_vm1, %v2150_v3 }
 0x578   :  { %2013 = vmatprep.subr.mxu1 %v2150_v3 }
 0x579   :  { %2014 = vmatpush3.msra.mxu1 %v1261_v25 }
 0x57a   :  { %2016 = vmatmul.mubr.msk.f32.vlgmr.msra.gmra.mxu1 %vm947_vm4, %v1267_v24  ;;  %2018 = vmatprep.subr.mxu1 %v2150_v3 }
 0x57b   :  { %2026 = vmatprep.mubr.msk.f32.mxu1 %vm2151_vm1, %v2150_v3  ;;  %2019 = vmatpush3.msra.mxu1 %v1461_v45  ;;  %v1638_v45 = vld [vmem:[%s2690_s6 + $0x28] sm:$0xff] }
 0x57c   :  { %2020 = vmatprep.subr.mxu1 %v2150_v3 }
 0x57d   :  { %2021 = vmatpush3.msra.mxu1 %v1460_v54  ;;  %v1635_v54 = vld [vmem:[%s2690_s6 + $0x10] sm:$0xff]  ;;  %s2155_s6 = smov [#allocation7]  }
 0x57e   :  { %2022 = vmatprep.subr.mxu1 %v2150_v3  ;;  %s1730_s22 = sshll.u32 %s2155_s6, 4  ;;  %s1731_s22 = int_to_ptr.vmem [resolvable:$true] %s1730_s22 }
 0x57f   :  { %2023 = vmatpush3.msra.mxu1 %v1459_v57  ;;  %s2120_s5 = scalar_lea.vmem %s1731_s22, 128  ;;  %p2125_p11 = scmp.lt.s32.totalorder %s1731_s22, %s1731_s22 }
 0x580   :  { %2024 = vmatprep.subr.mxu1 %v2150_v3  ;;  %p2121_p10 = scmp.ne.s32.totalorder %s1731_s22, %s2120_s5  ;;  %p2126_p12 = scmp.lt.s32.totalorder %s2120_s5, %s2120_s5 }
 0x581   :  { %2025 = vmatpush3.msra.mxu1 %v1458_v60 }
 0x582   :  { %2029 = vmatprep.subr.mxu1 %v2150_v3  ;;  %p2127_p13 = por %p2126_p12, %p2125_p11 }
 0x584   :  { %p2128_p0 = pnand %p2127_p13, %p2121_p10 }
 0x626   :  { %v1026_v61 = vpop.f32.mrf.mxu1 }
 0x628   :  { %v1028_v62 = vpop.f32.mrf.mxu1 }
 0x62a   :  { %v1097_v63 = vpop.f32.mrf.mxu1 }
 0x62c   :  { %v2003_v0 = vpop.f32.mrf.mxu1 }
 0x62e   :  { %v1179_v2 = vpop.f32.mrf.mxu1 }
 0x62f   :  { %v1180_v58 = vadd.f32 %v1179_v2, %v1026_v61  ;;  %v1630_v61 = vsub.s32 3, %v2234_v49 }
 0x630   :  { %v1181_v4 = vpop.f32.mrf.mxu1 }
 0x631   :  { %v1182_v12 = vadd.f32 %v1181_v4, %v1028_v62  ;;  %v1626_v62 = vrot.slane %v2615_v20, %v2436_v50  ;;  %v1631_v1 = vrot.slane %v2615_v20, %v1630_v61 }
 0x632   :  { %v1250_v7 = vpop.f32.mrf.mxu1 }
 0x633   :  { %v1251_v52 = vadd.f32 %v1250_v7, %v1097_v63 }
 0x634   :  { %v2010_v8 = vpop.f32.mrf.mxu1 }
 0x636   :  { %v1345_v11 = vpop.f32.mrf.mxu1 }
 0x637   :  { %v1420_v13 = vadd.f32 %v1345_v11, %v1180_v58 }
 0x638   :  { %v1347_v14 = vpop.f32.mrf.mxu1 }
 0x639   :  { %v1421_v16 = vadd.f32 %v1347_v14, %v1182_v12  ;;  %v1423_v23 = vmul.f32 %v1420_v13, %v632_v17 }
 0x63a   :  { %v1416_v19 = vpop.f32.mrf.mxu1 }
 0x63b   :  { %v1424_v21 = vmul.f32 %v1421_v16, %v634_v15  ;;  %v1422_v48 = vadd.f32 %v1416_v19, %v1251_v52 }
 0x63c   :  { %v2017_v24 = vpop.f32.mrf.mxu1 }
 0x63d   :  { %v1425_v25 = vmul.f32 %v1422_v48, %v2440_v18  ;;  %1533 = vmatprep.mubr.f32.mxu0 %v1424_v21 }
 0x63e   :  { %1534 = vmatmul.mubr.f32.vlgmr.msra.gmra.mxu0 %v1423_v23 }
 0x63f   :  { %2027 = vmatmul.mubr.msk.f32.vlgmr.msra.gmra.mxu1 %vm745_vm2, %v1425_v25 }
 0x640   :  { %2053 = vmatprep.mubr.msk.f32.mxu1 %vm2151_vm1, %v2150_v3  ;;  %2030 = vmatpush3.msra.mxu1 %v1644_v46 }
 0x641   :  { %2031 = vmatprep.subr.mxu1 %v2150_v3 }
 0x642   :  { %2032 = vmatpush3.msra.mxu1 %v1643_v40 }
 0x643   :  { %2033 = vmatprep.subr.mxu1 %v2150_v3 }
 0x644   :  { %2034 = vmatpush3.msra.mxu1 %v1642_v41 }
 0x645   :  { %2035 = vmatprep.subr.mxu1 %v2150_v3 }
 0x646   :  { %2036 = vmatpush3.msra.mxu1 %v1641_v42 }
 0x647   :  { %2037 = vmatprep.subr.mxu1 %v2150_v3 }
 0x648   :  { %2038 = vmatpush3.msra.mxu1 %v1640_v43 }
 0x649   :  { %2039 = vmatprep.subr.mxu1 %v2150_v3 }
 0x64a   :  { %2040 = vmatpush3.msra.mxu1 %v1639_v44 }
 0x64b   :  { %2041 = vmatprep.subr.mxu1 %v2150_v3 }
 0x64c   :  { %2042 = vmatpush3.msra.mxu1 %v1638_v45 }
 0x64d   :  { %2043 = vmatprep.subr.mxu1 %v2150_v3 }
 0x64e   :  { %2044 = vmatpush3.msra.mxu1 %v1637_v51 }
 0x64f   :  { %2045 = vmatprep.subr.mxu1 %v2150_v3 }
 0x650   :  { %2046 = vmatpush3.msra.mxu1 %v1636_v53 }
 0x651   :  { %2047 = vmatprep.subr.mxu1 %v2150_v3 }
 0x652   :  { %2048 = vmatpush3.msra.mxu1 %v1635_v54 }
 0x653   :  { %2049 = vmatprep.subr.mxu1 %v2150_v3 }
 0x654   :  { %2050 = vmatpush3.msra.mxu1 %v1634_v55 }
 0x655   :  { %2051 = vmatprep.subr.mxu1 %v2150_v3  ;;  %v1648_v3 = vrot.slane %v2615_v20, %v339_v47 }
 0x656   :  { %2052 = vmatpush3.msra.mxu1 %v1633_v56 }
 0x6fe   :  { %v1884_v26 = vpop.f32.mrf.mxu0 }
 0x6ff   :  { %v1605_v22 = vpop.f32.mrf.mxu1 }
 0x700   :  { %v1885_v28 = vpop.f32.mrf.mxu0 }
 0x701   :  { %v1886_v18 = vadd.f32 %v1885_v28, %v1884_v26  ;;  %v2028_v29 = vpop.f32.mrf.mxu1 }
 0x703   :  { %v1536_v30 = vadd.f32 %v1886_v18, %v1465_v27 }
 0x705   :  { %v1606_v31 = vadd.f32 %v1605_v22, %v1536_v30 }
 0x707   :  { %v1609_v33 = vadd.f32 %v2079_v32, %v1606_v31 }
 0x709   :  { %v1610_v34 = vsel %vm62_vm0, %v1609_v33, 0.0 }
 0x70a   :  { %1611 = vadd.xlane.f32.xlu1 %v1610_v34 }
 0x793   :  { %v1612_v35 = vpop.xlane.xlu1 %1611 }
 0x794   :  { %v1613_v36 = vmul.f32 0.010416667, %v1612_v35 }
 0x796   :  { %v1614_v37 = vsub.f32 %v1609_v33, %v1613_v36 }
 0x798   :  { %v1615_v38 = vmul.f32 %v1614_v37, %v1614_v37 }
 0x79a   :  { %v1616_v39 = vsel %vm62_vm0, %v1615_v38, 0.0 }
 0x79b   :  { %1617 = vadd.xlane.f32.xlu0 %v1616_v39 }
 0x824   :  { %v1618_v57 = vpop.xlane.xlu0 %1617 }
 0x825   :  { %v1619_v59 = vmul.f32 0.010416667, %v1618_v57 }
 0x827   :  { %v1620_v60 = vadd.f32 1e-05, %v1619_v59 }
 0x829   :  { %2076 = vrsqrt.f32 %v1620_v60 }
 0x836   :  { %v2077_v63 = vpop.eup %2076 }
 0x837   :  { %v1622_v0 = vmul.f32 %v2077_v63, %v1614_v37 }
 0x839   :  { %v1627_v2 = vmul.f32 %v1626_v62, %v1622_v0 }
 0x83b   :  { %v1632_v4 = vadd.f32 %v1631_v1, %v1627_v2 }
 0x83d   :  { %2054 = vmatmul.mubr.msk.f32.vlgmr.msra.gmra.mxu1 %vm62_vm0, %v1632_v4 }
 0x8fd   :  { %v1718_v5 = vpop.f32.mrf.mxu1 }
 0x8fe   :  { %v1719_v6 = vadd.f32 %v1718_v5, %v1648_v3 }
 0x8ff   :  { %v2055_v7 = vpop.f32.mrf.mxu1 }
 0x900   :  { %v1722_v8 = vadd.f32 %v1719_v6, %v1609_v33 }
 0x902   :  { %1723 = vst.msk [vmem:[#allocation7] sm:$0xff] %vm62_vm0, %v1722_v8 }
 0x903   :  { %2131 = shalt.err (!%p2128_p0)
}
 0x904   :  { %1733 = dma.vmem_to_hbm [thread:$0]  %s1731_s22, 128, %s2692_s8, [#allocation4]  }
 0x905   :  { %2144 = dma.done.wait [#allocation4], 128  }
 0x906   :  { %2145 = vsyncadd [#allocation4], 4294967168 }
 0x907   :  { %1737 = vsyncpa [#allocation3], 1 }
 0x908   :  { %1738 = vsyncpa [#allocation6], 1 }
 0x909   :  { %1739 = vsyncpa [#allocation4], 1 }

</bundles_post_ra>
